<compile_context>
chip_gen: v5e
topology: v5e:2x2
jax: 0.10.0
libtpu: 0.0.40
codegen_flags: <defaults>
</compile_context>

<pallas_src>
import jax
import jax.numpy as jnp
from jax.experimental import pallas as pl
from jax.experimental.pallas import tpu as pltpu


def _fill_im2col_w(col_ref, a):
    """col_ref[hp, w, kx*C + c] = a_padded[hp, w + kx - 1, c]  (zero pad of 1 around `a`).

    a: (H, W, C) value.  col_ref: (H+2, W, 3*C) VMEM scratch.
    Only the two halo rows are zeroed (interior fully overwritten each step); all
    scratch stores are full-width / sublane-aligned.
    """
    H, W, C = a.shape
    zcol = jnp.zeros((H, 1, C), a.dtype)
    left = jnp.concatenate([zcol, a[:, :W - 1, :]], axis=1)   # value at w holds a[., w-1, .]
    right = jnp.concatenate([a[:, 1:, :], zcol], axis=1)      # value at w holds a[., w+1, .]
    body = jnp.concatenate([left, a, right], axis=2)          # (H, W, 3C), kx-major channels
    col_ref[0, :, :] = jnp.zeros((W, 3 * C), a.dtype)
    col_ref[H + 1, :, :] = jnp.zeros((W, 3 * C), a.dtype)
    col_ref[1:H + 1, :, :] = body


def flow_head_kernel(x_ref, w1_ref, b1_ref, w2_ref, b2_ref, o_ref,
                     xcol_ref, mcol_ref):
    # x_ref:   (1, H, W, Cin)        bf16, one (unpadded) batch element
    # w1_ref:  (3, 3*Cin, Cmid)      bf16, dy-major, dx folded into K
    # b1_ref:  (1, Cmid)             f32
    # w2_ref:  (3, 3*Cmid, Cout_p)   bf16
    # b2_ref:  (1, Cout_p)           f32
    # o_ref:   (1, Cout_p, H*W)      f32 (lane-dense: H*W on the lane axis)
    # xcol_ref: (H+2, W, 3*Cin)      bf16 VMEM scratch (im2col along W, conv1)
    # mcol_ref: (H+2, W, 3*Cmid)     bf16 VMEM scratch (im2col along W, conv2)
    _, H, W, Cin = x_ref.shape
    Cmid = w1_ref.shape[2]
    HW = H * W
    K1 = 3 * Cin
    K2 = 3 * Cmid
    Cout_p = o_ref.shape[1]

    # ---- conv1: 3 matmuls (one per dy), (HW, 3*Cin) @ (3*Cin, Cmid), f32 accumulation ----
    _fill_im2col_w(xcol_ref, x_ref[0])
    acc = jnp.zeros((HW, Cmid), jnp.float32)
    for dy in range(3):                                      # static unroll (3 taps)
        patch = xcol_ref[dy:dy + H].reshape(HW, K1)          # free reshape (W % 8 == 0)
        acc = acc + jnp.dot(patch, w1_ref[dy], preferred_element_type=jnp.float32)
    acc = jnp.maximum(acc + b1_ref[...], 0.0)                # bias + ReLU in f32

    # ---- conv2: same structure on the bf16 intermediate ----
    _fill_im2col_w(mcol_ref, acc.astype(mcol_ref.dtype).reshape(H, W, Cmid))
    acc2 = jnp.zeros((HW, Cout_p), jnp.float32)
    for dy in range(3):
        patch = mcol_ref[dy:dy + H].reshape(HW, K2)
        acc2 = acc2 + jnp.dot(patch, w2_ref[dy], preferred_element_type=jnp.float32)
    acc2 = acc2 + b2_ref[...]

    # Lane-dense store: (HW, Cout_p) -> (Cout_p, HW); H*W (=256) on the lane axis.
    o_ref[0] = jnp.transpose(acc2, (1, 0)).astype(o_ref.dtype)


def flow_head_pallas(x_nchw, w1_oihw, b1, w2_oihw, b2):
    """FlowHead forward.  x_nchw: (N, Cin, H, W) f32; weights in PyTorch OIHW layout.
    Returns (N, Cout, H, W) f32 (NCHW), matching the PyTorch module."""
    N, Cin, H, W = x_nchw.shape
    Cmid = w1_oihw.shape[0]
    Cout = w2_oihw.shape[0]
    assert W % 8 == 0, "W must be a multiple of 8 (sublane tiling / free reshapes)"
    cout_p = max(8, -(-Cout // 8) * 8)  # pad conv2 output channels to a sublane multiple

    # One-time layout prep (tiny XLA ops): activations -> NHWC bf16; weights OIHW ->
    # (dy, dx*Cin + c, o) bf16 with dx folded into K; conv2 weight/bias zero-padded.
    x_nhwc = jnp.transpose(x_nchw, (0, 2, 3, 1)).astype(jnp.bfloat16)
    w1r = jnp.transpose(w1_oihw, (2, 3, 1, 0)).reshape(3, 3 * Cin, Cmid)
    w1r = w1r.astype(jnp.bfloat16)
    w2r = jnp.transpose(w2_oihw, (2, 3, 1, 0)).reshape(3, 3 * Cmid, Cout)
    w2r = jnp.pad(w2r, ((0, 0), (0, 0), (0, cout_p - Cout))).astype(jnp.bfloat16)
    b1r = b1.reshape(1, Cmid).astype(jnp.float32)
    b2r = jnp.pad(b2, (0, cout_p - Cout)).reshape(1, cout_p).astype(jnp.float32)

    grid_spec = pltpu.PrefetchScalarGridSpec(
        num_scalar_prefetch=0,
        grid=(N,),
        in_specs=[
            pl.BlockSpec((1, H, W, Cin), lambda b: (b, 0, 0, 0)),
            pl.BlockSpec((3, 3 * Cin, Cmid), lambda b: (0, 0, 0)),
            pl.BlockSpec((1, Cmid), lambda b: (0, 0)),
            pl.BlockSpec((3, 3 * Cmid, cout_p), lambda b: (0, 0, 0)),
            pl.BlockSpec((1, cout_p), lambda b: (0, 0)),
        ],
        out_specs=pl.BlockSpec((1, cout_p, H * W), lambda b: (b, 0, 0)),
        scratch_shapes=[
            pltpu.VMEM((H + 2, W, 3 * Cin), jnp.bfloat16),
            pltpu.VMEM((H + 2, W, 3 * Cmid), jnp.bfloat16),
        ],
    )

    out = pl.pallas_call(
        flow_head_kernel,
        out_shape=jax.ShapeDtypeStruct((N, cout_p, H * W), jnp.float32),
        grid_spec=grid_spec,
        compiler_params=pltpu.CompilerParams(
            dimension_semantics=("parallel",),      # batch elements are independent
            vmem_limit_bytes=32 * 1024 * 1024,
        ),
    )(x_nhwc, w1r, b1r, w2r, b2r)

    # (N, cout_p, H*W) -> (N, Cout, H, W): cheap channel slice + metadata reshape (NCHW).
    return out[:, :Cout, :].reshape(N, Cout, H, W)


def flow_head_reference(x_nchw, w1_oihw, b1, w2_oihw, b2):
    """Pure-f32 XLA reference (mirrors the PyTorch module, NCHW/OIHW)."""
    y = jax.lax.conv_general_dilated(
        x_nchw, w1_oihw, window_strides=(1, 1), padding=((1, 1), (1, 1)),
        dimension_numbers=("NCHW", "OIHW", "NCHW"))
    y = jax.nn.relu(y + b1.reshape(1, -1, 1, 1))
    y = jax.lax.conv_general_dilated(
        y, w2_oihw, window_strides=(1, 1), padding=((1, 1), (1, 1)),
        dimension_numbers=("NCHW", "OIHW", "NCHW"))
    return y + b2.reshape(1, -1, 1, 1)


if __name__ == "__main__":
    # Small FlowHead(in=4, mid=32, out=2) at 16x16 spatial, batch 2 (PyTorch NCHW input).
    N, Cin, H, W = 2, 4, 16, 16
    Cmid, Cout = 32, 2

    key = jax.random.PRNGKey(0)
    kx, kw1, kb1, kw2, kb2 = jax.random.split(key, 5)

    x_nchw = jax.random.normal(kx, (N, Cin, H, W), jnp.float32)
    w1_oihw = jax.random.normal(kw1, (Cmid, Cin, 3, 3), jnp.float32) * 0.1
    b1 = jax.random.normal(kb1, (Cmid,), jnp.float32) * 0.1
    w2_oihw = jax.random.normal(kw2, (Cout, Cmid, 3, 3), jnp.float32) * 0.1
    b2 = jax.random.normal(kb2, (Cout,), jnp.float32) * 0.1

    out = flow_head_pallas(x_nchw, w1_oihw, b1, w2_oihw, b2)
    out = jax.block_until_ready(out)

    ref = flow_head_reference(x_nchw, w1_oihw, b1, w2_oihw, b2)
    assert out.shape == (N, Cout, H, W)
    # bf16 matmul operands (f32 accumulation) -> loosened tolerance vs f32 reference.
    err = float(jnp.max(jnp.abs(out - ref)))
    assert jnp.allclose(out, ref, atol=7.5e-2, rtol=5e-2), \
        f"mismatch vs reference, max abs err={err}"

    print("KERNEL_OK")
</pallas_src>

<mosaic_0001>
module attributes {stable_mosaic.version = 11 : i64} {
  func.func @flow_head_kernel(%arg0: i32, %arg1: memref<1x16x16x4xbf16, #tpu.memory_space<vmem>>, %arg2: memref<3x12x32xbf16, #tpu.memory_space<vmem>>, %arg3: memref<1x32xf32, #tpu.memory_space<vmem>>, %arg4: memref<3x96x8xbf16, #tpu.memory_space<vmem>>, %arg5: memref<1x8xf32, #tpu.memory_space<vmem>>, %arg6: memref<1x8x256xf32, #tpu.memory_space<vmem>>, %arg7: memref<18x16x12xbf16, #tpu.memory_space<vmem>>, %arg8: memref<18x16x96xbf16, #tpu.memory_space<vmem>>) attributes {dimension_semantics = [#tpu.dimension_semantics<parallel>], iteration_bounds = array<i64: 2>, scalar_prefetch = 0 : i64, scratch_operands = 2 : i64, tpu.core_type = #tpu.core_type<tc>, window_params = [{transform_indices = @transform_0, window_bounds = array<i64: 1, 16, 16, 4>}, {pipeline_mode = #tpu.pipeline_mode<synchronous>, transform_indices = @transform_1, window_bounds = array<i64: 3, 12, 32>}, {pipeline_mode = #tpu.pipeline_mode<synchronous>, transform_indices = @transform_2, window_bounds = array<i64: 1, 32>}, {pipeline_mode = #tpu.pipeline_mode<synchronous>, transform_indices = @transform_3, window_bounds = array<i64: 3, 96, 8>}, {pipeline_mode = #tpu.pipeline_mode<synchronous>, transform_indices = @transform_4, window_bounds = array<i64: 1, 8>}, {transform_indices = @transform_5, window_bounds = array<i64: 1, 8, 256>}]} {
    %c0 = arith.constant 0 : index
    %c0_0 = arith.constant 0 : index
    %c0_1 = arith.constant 0 : index
    %c0_2 = arith.constant 0 : index
    %0 = vector.load %arg1[%c0, %c0_0, %c0_1, %c0_2] : memref<1x16x16x4xbf16, #tpu.memory_space<vmem>>, vector<1x16x16x4xbf16>
    %1 = vector.shape_cast %0 : vector<1x16x16x4xbf16> to vector<16x16x4xbf16>
    %cst = arith.constant 0.000000e+00 : bf16
    %2 = vector.broadcast %cst : bf16 to vector<16x1x4xbf16>
    %3 = vector.extract_strided_slice %1 {offsets = [0, 0, 0], sizes = [16, 15, 4], strides = [1, 1, 1]} : vector<16x16x4xbf16> to vector<16x15x4xbf16>
    %4 = tpu.concatenate %2, %3 in 1 : vector<16x1x4xbf16>, vector<16x15x4xbf16> -> vector<16x16x4xbf16>
    %5 = vector.extract_strided_slice %1 {offsets = [0, 1, 0], sizes = [16, 15, 4], strides = [1, 1, 1]} : vector<16x16x4xbf16> to vector<16x15x4xbf16>
    %6 = tpu.concatenate %5, %2 in 1 : vector<16x15x4xbf16>, vector<16x1x4xbf16> -> vector<16x16x4xbf16>
    %7 = tpu.concatenate %4, %1, %6 in 2 : vector<16x16x4xbf16>, vector<16x16x4xbf16>, vector<16x16x4xbf16> -> vector<16x16x12xbf16>
    %cst_3 = arith.constant 0.000000e+00 : bf16
    %8 = vector.broadcast %cst_3 : bf16 to vector<16x12xbf16>
    %c0_4 = arith.constant 0 : index
    %c0_5 = arith.constant 0 : index
    %c0_6 = arith.constant 0 : index
    %9 = vector.load %arg7[%c0_4, %c0_5, %c0_6] : memref<18x16x12xbf16, #tpu.memory_space<vmem>>, vector<1x16x12xbf16>
    %10 = vector.shape_cast %9 : vector<1x16x12xbf16> to vector<16x12xbf16>
    %11 = vector.shape_cast %8 : vector<16x12xbf16> to vector<1x16x12xbf16>
    tpu.vector_store %arg7[%c0_4, %c0_5, %c0_6], %11 {strides = array<i32>} : memref<18x16x12xbf16, #tpu.memory_space<vmem>>, vector<1x16x12xbf16>,
    %cst_7 = arith.constant 0.000000e+00 : bf16
    %12 = vector.broadcast %cst_7 : bf16 to vector<16x12xbf16>
    %c17 = arith.constant 17 : index
    %c0_8 = arith.constant 0 : index
    %c0_9 = arith.constant 0 : index
    %13 = vector.load %arg7[%c17, %c0_8, %c0_9] : memref<18x16x12xbf16, #tpu.memory_space<vmem>>, vector<1x16x12xbf16>
    %14 = vector.shape_cast %13 : vector<1x16x12xbf16> to vector<16x12xbf16>
    %15 = vector.shape_cast %12 : vector<16x12xbf16> to vector<1x16x12xbf16>
    tpu.vector_store %arg7[%c17, %c0_8, %c0_9], %15 {strides = array<i32>} : memref<18x16x12xbf16, #tpu.memory_space<vmem>>, vector<1x16x12xbf16>,
    %c1 = arith.constant 1 : index
    %c0_10 = arith.constant 0 : index
    %c0_11 = arith.constant 0 : index
    %16 = vector.load %arg7[%c1, %c0_10, %c0_11] : memref<18x16x12xbf16, #tpu.memory_space<vmem>>, vector<16x16x12xbf16>
    tpu.vector_store %arg7[%c1, %c0_10, %c0_11], %7 {strides = array<i32>} : memref<18x16x12xbf16, #tpu.memory_space<vmem>>, vector<16x16x12xbf16>,
    %cst_12 = arith.constant 0.000000e+00 : f32
    %17 = vector.broadcast %cst_12 : f32 to vector<256x32xf32>
    %c0_13 = arith.constant 0 : index
    %c0_14 = arith.constant 0 : index
    %c0_15 = arith.constant 0 : index
    %18 = vector.load %arg7[%c0_13, %c0_14, %c0_15] : memref<18x16x12xbf16, #tpu.memory_space<vmem>>, vector<16x16x12xbf16>
    %19 = vector.shape_cast %18 : vector<16x16x12xbf16> to vector<256x12xbf16>
    %c0_16 = arith.constant 0 : index
    %c0_17 = arith.constant 0 : index
    %c0_18 = arith.constant 0 : index
    %20 = vector.load %arg2[%c0_16, %c0_17, %c0_18] : memref<3x12x32xbf16, #tpu.memory_space<vmem>>, vector<1x12x32xbf16>
    %21 = vector.shape_cast %20 : vector<1x12x32xbf16> to vector<12x32xbf16>
    %cst_19 = arith.constant dense<0.000000e+00> : vector<256x32xf32>
    %22 = tpu.matmul %19, %21, %cst_19 {dimension_numbers = #tpu.dot_dimension_numbers<[1], [0], [0], [1], [0, 0, 1, 1], [], []>} : vector<256x12xbf16>, vector<12x32xbf16>, vector<256x32xf32> -> vector<256x32xf32>
    %23 = arith.addf %17, %22 : vector<256x32xf32>
    %c1_20 = arith.constant 1 : index
    %c0_21 = arith.constant 0 : index
    %c0_22 = arith.constant 0 : index
    %24 = vector.load %arg7[%c1_20, %c0_21, %c0_22] : memref<18x16x12xbf16, #tpu.memory_space<vmem>>, vector<16x16x12xbf16>
    %25 = vector.shape_cast %24 : vector<16x16x12xbf16> to vector<256x12xbf16>
    %c1_23 = arith.constant 1 : index
    %c0_24 = arith.constant 0 : index
    %c0_25 = arith.constant 0 : index
    %26 = vector.load %arg2[%c1_23, %c0_24, %c0_25] : memref<3x12x32xbf16, #tpu.memory_space<vmem>>, vector<1x12x32xbf16>
    %27 = vector.shape_cast %26 : vector<1x12x32xbf16> to vector<12x32xbf16>
    %cst_26 = arith.constant dense<0.000000e+00> : vector<256x32xf32>
    %28 = tpu.matmul %25, %27, %cst_26 {dimension_numbers = #tpu.dot_dimension_numbers<[1], [0], [0], [1], [0, 0, 1, 1], [], []>} : vector<256x12xbf16>, vector<12x32xbf16>, vector<256x32xf32> -> vector<256x32xf32>
    %29 = arith.addf %23, %28 : vector<256x32xf32>
    %c2 = arith.constant 2 : index
    %c0_27 = arith.constant 0 : index
    %c0_28 = arith.constant 0 : index
    %30 = vector.load %arg7[%c2, %c0_27, %c0_28] : memref<18x16x12xbf16, #tpu.memory_space<vmem>>, vector<16x16x12xbf16>
    %31 = vector.shape_cast %30 : vector<16x16x12xbf16> to vector<256x12xbf16>
    %c2_29 = arith.constant 2 : index
    %c0_30 = arith.constant 0 : index
    %c0_31 = arith.constant 0 : index
    %32 = vector.load %arg2[%c2_29, %c0_30, %c0_31] : memref<3x12x32xbf16, #tpu.memory_space<vmem>>, vector<1x12x32xbf16>
    %33 = vector.shape_cast %32 : vector<1x12x32xbf16> to vector<12x32xbf16>
    %cst_32 = arith.constant dense<0.000000e+00> : vector<256x32xf32>
    %34 = tpu.matmul %31, %33, %cst_32 {dimension_numbers = #tpu.dot_dimension_numbers<[1], [0], [0], [1], [0, 0, 1, 1], [], []>} : vector<256x12xbf16>, vector<12x32xbf16>, vector<256x32xf32> -> vector<256x32xf32>
    %35 = arith.addf %29, %34 : vector<256x32xf32>
    %c0_33 = arith.constant 0 : index
    %c0_34 = arith.constant 0 : index
    %36 = vector.load %arg3[%c0_33, %c0_34] : memref<1x32xf32, #tpu.memory_space<vmem>>, vector<1x32xf32>
    %37 = vector.broadcast %36 : vector<1x32xf32> to vector<256x32xf32>
    %38 = arith.addf %35, %37 : vector<256x32xf32>
    %cst_35 = arith.constant 0.000000e+00 : f32
    %39 = vector.broadcast %cst_35 : f32 to vector<256x32xf32>
    %40 = arith.maximumf %38, %39 : vector<256x32xf32>
    %41 = arith.truncf %40 : vector<256x32xf32> to vector<256x32xbf16>
    %42 = vector.shape_cast %41 : vector<256x32xbf16> to vector<16x16x32xbf16>
    %cst_36 = arith.constant 0.000000e+00 : bf16
    %43 = vector.broadcast %cst_36 : bf16 to vector<16x1x32xbf16>
    %44 = vector.extract_strided_slice %42 {offsets = [0, 0, 0], sizes = [16, 15, 32], strides = [1, 1, 1]} : vector<16x16x32xbf16> to vector<16x15x32xbf16>
    %45 = tpu.concatenate %43, %44 in 1 : vector<16x1x32xbf16>, vector<16x15x32xbf16> -> vector<16x16x32xbf16>
    %46 = vector.extract_strided_slice %42 {offsets = [0, 1, 0], sizes = [16, 15, 32], strides = [1, 1, 1]} : vector<16x16x32xbf16> to vector<16x15x32xbf16>
    %47 = tpu.concatenate %46, %43 in 1 : vector<16x15x32xbf16>, vector<16x1x32xbf16> -> vector<16x16x32xbf16>
    %48 = tpu.concatenate %45, %42, %47 in 2 : vector<16x16x32xbf16>, vector<16x16x32xbf16>, vector<16x16x32xbf16> -> vector<16x16x96xbf16>
    %cst_37 = arith.constant 0.000000e+00 : bf16
    %49 = vector.broadcast %cst_37 : bf16 to vector<16x96xbf16>
    %c0_38 = arith.constant 0 : index
    %c0_39 = arith.constant 0 : index
    %c0_40 = arith.constant 0 : index
    %50 = vector.load %arg8[%c0_38, %c0_39, %c0_40] : memref<18x16x96xbf16, #tpu.memory_space<vmem>>, vector<1x16x96xbf16>
    %51 = vector.shape_cast %50 : vector<1x16x96xbf16> to vector<16x96xbf16>
    %52 = vector.shape_cast %49 : vector<16x96xbf16> to vector<1x16x96xbf16>
    tpu.vector_store %arg8[%c0_38, %c0_39, %c0_40], %52 {strides = array<i32>} : memref<18x16x96xbf16, #tpu.memory_space<vmem>>, vector<1x16x96xbf16>,
    %cst_41 = arith.constant 0.000000e+00 : bf16
    %53 = vector.broadcast %cst_41 : bf16 to vector<16x96xbf16>
    %c17_42 = arith.constant 17 : index
    %c0_43 = arith.constant 0 : index
    %c0_44 = arith.constant 0 : index
    %54 = vector.load %arg8[%c17_42, %c0_43, %c0_44] : memref<18x16x96xbf16, #tpu.memory_space<vmem>>, vector<1x16x96xbf16>
    %55 = vector.shape_cast %54 : vector<1x16x96xbf16> to vector<16x96xbf16>
    %56 = vector.shape_cast %53 : vector<16x96xbf16> to vector<1x16x96xbf16>
    tpu.vector_store %arg8[%c17_42, %c0_43, %c0_44], %56 {strides = array<i32>} : memref<18x16x96xbf16, #tpu.memory_space<vmem>>, vector<1x16x96xbf16>,
    %c1_45 = arith.constant 1 : index
    %c0_46 = arith.constant 0 : index
    %c0_47 = arith.constant 0 : index
    %57 = vector.load %arg8[%c1_45, %c0_46, %c0_47] : memref<18x16x96xbf16, #tpu.memory_space<vmem>>, vector<16x16x96xbf16>
    tpu.vector_store %arg8[%c1_45, %c0_46, %c0_47], %48 {strides = array<i32>} : memref<18x16x96xbf16, #tpu.memory_space<vmem>>, vector<16x16x96xbf16>,
    %cst_48 = arith.constant 0.000000e+00 : f32
    %58 = vector.broadcast %cst_48 : f32 to vector<256x8xf32>
    %c0_49 = arith.constant 0 : index
    %c0_50 = arith.constant 0 : index
    %c0_51 = arith.constant 0 : index
    %59 = vector.load %arg8[%c0_49, %c0_50, %c0_51] : memref<18x16x96xbf16, #tpu.memory_space<vmem>>, vector<16x16x96xbf16>
    %60 = vector.shape_cast %59 : vector<16x16x96xbf16> to vector<256x96xbf16>
    %c0_52 = arith.constant 0 : index
    %c0_53 = arith.constant 0 : index
    %c0_54 = arith.constant 0 : index
    %61 = vector.load %arg4[%c0_52, %c0_53, %c0_54] : memref<3x96x8xbf16, #tpu.memory_space<vmem>>, vector<1x96x8xbf16>
    %62 = vector.shape_cast %61 : vector<1x96x8xbf16> to vector<96x8xbf16>
    %cst_55 = arith.constant dense<0.000000e+00> : vector<256x8xf32>
    %63 = tpu.matmul %60, %62, %cst_55 {dimension_numbers = #tpu.dot_dimension_numbers<[1], [0], [0], [1], [0, 0, 1, 1], [], []>} : vector<256x96xbf16>, vector<96x8xbf16>, vector<256x8xf32> -> vector<256x8xf32>
    %64 = arith.addf %58, %63 : vector<256x8xf32>
    %c1_56 = arith.constant 1 : index
    %c0_57 = arith.constant 0 : index
    %c0_58 = arith.constant 0 : index
    %65 = vector.load %arg8[%c1_56, %c0_57, %c0_58] : memref<18x16x96xbf16, #tpu.memory_space<vmem>>, vector<16x16x96xbf16>
    %66 = vector.shape_cast %65 : vector<16x16x96xbf16> to vector<256x96xbf16>
    %c1_59 = arith.constant 1 : index
    %c0_60 = arith.constant 0 : index
    %c0_61 = arith.constant 0 : index
    %67 = vector.load %arg4[%c1_59, %c0_60, %c0_61] : memref<3x96x8xbf16, #tpu.memory_space<vmem>>, vector<1x96x8xbf16>
    %68 = vector.shape_cast %67 : vector<1x96x8xbf16> to vector<96x8xbf16>
    %cst_62 = arith.constant dense<0.000000e+00> : vector<256x8xf32>
    %69 = tpu.matmul %66, %68, %cst_62 {dimension_numbers = #tpu.dot_dimension_numbers<[1], [0], [0], [1], [0, 0, 1, 1], [], []>} : vector<256x96xbf16>, vector<96x8xbf16>, vector<256x8xf32> -> vector<256x8xf32>
    %70 = arith.addf %64, %69 : vector<256x8xf32>
    %c2_63 = arith.constant 2 : index
    %c0_64 = arith.constant 0 : index
    %c0_65 = arith.constant 0 : index
    %71 = vector.load %arg8[%c2_63, %c0_64, %c0_65] : memref<18x16x96xbf16, #tpu.memory_space<vmem>>, vector<16x16x96xbf16>
    %72 = vector.shape_cast %71 : vector<16x16x96xbf16> to vector<256x96xbf16>
    %c2_66 = arith.constant 2 : index
    %c0_67 = arith.constant 0 : index
    %c0_68 = arith.constant 0 : index
    %73 = vector.load %arg4[%c2_66, %c0_67, %c0_68] : memref<3x96x8xbf16, #tpu.memory_space<vmem>>, vector<1x96x8xbf16>
    %74 = vector.shape_cast %73 : vector<1x96x8xbf16> to vector<96x8xbf16>
    %cst_69 = arith.constant dense<0.000000e+00> : vector<256x8xf32>
    %75 = tpu.matmul %72, %74, %cst_69 {dimension_numbers = #tpu.dot_dimension_numbers<[1], [0], [0], [1], [0, 0, 1, 1], [], []>} : vector<256x96xbf16>, vector<96x8xbf16>, vector<256x8xf32> -> vector<256x8xf32>
    %76 = arith.addf %70, %75 : vector<256x8xf32>
    %c0_70 = arith.constant 0 : index
    %c0_71 = arith.constant 0 : index
    %77 = vector.load %arg5[%c0_70, %c0_71] : memref<1x8xf32, #tpu.memory_space<vmem>>, vector<1x8xf32>
    %78 = vector.broadcast %77 : vector<1x8xf32> to vector<256x8xf32>
    %79 = arith.addf %76, %78 : vector<256x8xf32>
    %80 = tpu.transpose %79, [1, 0] : vector<256x8xf32> -> vector<8x256xf32>
    %c0_72 = arith.constant 0 : index
    %c0_73 = arith.constant 0 : index
    %c0_74 = arith.constant 0 : index
    %81 = vector.load %arg6[%c0_72, %c0_73, %c0_74] : memref<1x8x256xf32, #tpu.memory_space<vmem>>, vector<1x8x256xf32>
    %82 = vector.shape_cast %81 : vector<1x8x256xf32> to vector<8x256xf32>
    %83 = vector.shape_cast %80 : vector<8x256xf32> to vector<1x8x256xf32>
    tpu.vector_store %arg6[%c0_72, %c0_73, %c0_74], %83 {strides = array<i32>} : memref<1x8x256xf32, #tpu.memory_space<vmem>>, vector<1x8x256xf32>,
    return
  }
  func.func @transform_0(%arg0: i32) -> (i32, i32, i32, i32) {
    %c0_i32 = arith.constant 0 : i32
    %c0_i32_0 = arith.constant 0 : i32
    %c0_i32_1 = arith.constant 0 : i32
    %c0_i32_2 = arith.constant 0 : i32
    return %arg0, %c0_i32, %c0_i32_0, %c0_i32_1 : i32, i32, i32, i32
  }
  func.func @transform_1(%arg0: i32) -> (i32, i32, i32) {
    %c0_i32 = arith.constant 0 : i32
    %c0_i32_0 = arith.constant 0 : i32
    %c0_i32_1 = arith.constant 0 : i32
    %c0_i32_2 = arith.constant 0 : i32
    return %c0_i32, %c0_i32_0, %c0_i32_1 : i32, i32, i32
  }
  func.func @transform_2(%arg0: i32) -> (i32, i32) {
    %c0_i32 = arith.constant 0 : i32
    %c0_i32_0 = arith.constant 0 : i32
    %c0_i32_1 = arith.constant 0 : i32
    return %c0_i32, %c0_i32_0 : i32, i32
  }
  func.func @transform_3(%arg0: i32) -> (i32, i32, i32) {
    %c0_i32 = arith.constant 0 : i32
    %c0_i32_0 = arith.constant 0 : i32
    %c0_i32_1 = arith.constant 0 : i32
    %c0_i32_2 = arith.constant 0 : i32
    return %c0_i32, %c0_i32_0, %c0_i32_1 : i32, i32, i32
  }
  func.func @transform_4(%arg0: i32) -> (i32, i32) {
    %c0_i32 = arith.constant 0 : i32
    %c0_i32_0 = arith.constant 0 : i32
    %c0_i32_1 = arith.constant 0 : i32
    return %c0_i32, %c0_i32_0 : i32, i32
  }
  func.func @transform_5(%arg0: i32) -> (i32, i32, i32) {
    %c0_i32 = arith.constant 0 : i32
    %c0_i32_0 = arith.constant 0 : i32
    %c0_i32_1 = arith.constant 0 : i32
    return %arg0, %c0_i32, %c0_i32_0 : i32, i32, i32
  }
}

</mosaic_0001>

<bundles_post_ra>
// kernel: tpu_custom_call.1
= control target key start
LH: loop header
LB: loop body
LE: loop exit
PB: predicated region body
PF: predicated region fallthrough
CT: control target
= control target key end

     0   :  { %10 = vsyncpa [#allocation5], 0  ;;  %s5452_s0 = inlined_call_operand.vmem [shape: bf16[2,16,16,4], index: 0, kind: input, shape index: {}]   ;;  %s5453_s1 = inlined_call_operand.vmem [shape: bf16[3,12,32], index: 1, kind: input, shape index: {}]   ;;  %s5454_s2 = inlined_call_operand.vmem [shape: f32[1,32], index: 2, kind: input, shape index: {}]   ;;  %s5455_s3 = inlined_call_operand.vmem [shape: bf16[3,96,8], index: 3, kind: input, shape index: {}]   ;;  %s5456_s4 = inlined_call_operand.vmem [shape: f32[1,8], index: 4, kind: input, shape index: {}]   ;;  %s5457_s5 = inlined_call_operand.hbm [shape: f32[2,8,256], index: 5, kind: output, shape index: {}]  }
   0x1   :  { %12 = vsyncpa [#allocation5 + $0x1], 0  ;;  %s4434_s18 = smov 0   ;;  %s4436_s19 = smov 0  }
   0x2   :  { %s4438_s20 = smov 0   ;;  %s4440_s21 = smov 0  }
   0x3 LB: > { %s4455_s22 = sadd.s32 4294967295, %s4397_s21   ;;  %s3483_s23 = sadd.s32 4294967294, %s4397_s21   ;;  %s4397_s21 = sphi %s4440_s21, %s5467_s21   ;;  %s4393_s20 = sphi %s4438_s20, %s5466_s20   ;;  %s4389_s19 = sphi %s4436_s19, %s5465_s19   ;;  %s4385_s18 = sphi %s4434_s18, %s5464_s18  }
   0x4   : > { %s4459_s24 = sadd.s32 1, %s4397_s21   ;;  %s135_s25 = sadd.s32 1, %s4393_s20 }
   0x5   : > { %s132_s26 = ssub.s32 %s4397_s21, %s4459_s24  ;;  %p145_p0 = scmp.ne.s32.totalorder %s4393_s20, %s4389_s19 }
   0x6   : > { %p133_p1 = scmp.eq.s32.totalorder %s132_s26, 0  ;;  %p146_p2 = scmp.eq.s32.totalorder %s4455_s22, 1 }
   0x7   : > { %p151_p3 = scmp.ne.s32.totalorder %s4389_s19, %s4385_s18  ;;  %p152_p4 = scmp.eq.s32.totalorder %s3483_s23, 1 }
   0x8   : > { %s4470_s27 = scalar_select %p133_p1, %s4393_s20, %s135_s25  }
   0x9   : > { %p4472_p5 = por %p146_p2, %p145_p0  ;;  %p4476_p6 = por %p152_p4, %p151_p3 }
   0xa   : > { %p3486_p7 = scmp.ge.s32.totalorder %s4397_s21, 1  ;;  %p190_p8 = scmp.lt.s32.totalorder %s4397_s21, 3 }
   0xc   : > { %p191_p9 = pnand %p3486_p7, %p190_p8 }
   0xd   : > { %p218_p10 = scmp.lt.s32.totalorder (!%p191_p9), %s4455_s22, 1  ;;  %s4399_s10 = smov (!%p191_p9), 4  }
   0xe   : > { %194 = sbr.rel (%p191_p9) target bundleno = 1010 (0x3f2), region = 40  ;;  %s4400_s11 = smov (!%p191_p9), 8  }
   0xf   : > { %s4402_s16 = smov (!%p191_p9), 32   ;;  %s4403_s17 = smov (!%p191_p9), 64  }
  0x13   : > { %s219_s30 = scalar_select %p218_p10, %s4455_s22, 1  ;;  %vm531_vm0 = vcmask 1047552   ;;  %vm532_vm1 = vsmask.f32 7424  ;;  %vm1066_vm3 = vcmask 1045504   ;;  %vm464_vm4 = vcmask 1040384  }
  0x14   : > { %vm4511_vm2 = vmand %vm531_vm0, %vm532_vm1  ;;  %vm465_vm5 = vsmask.f32 256  ;;  %vm630_vm7 = vcmask 31744   ;;  %vm679_vm8 = vcmask 64512   ;;  %vm712_vm9 = vcmask 93184  }
  0x15   : > { %s4151_s6 = sshll.u32 %s219_s30, 7  ;;  %vm4708_vm6 = vmand %vm464_vm4, %vm465_vm5  ;;  %vm1017_vm10 = vcmask 97280   ;;  %vm2227_vm11 = vcmask 781312   ;;  %vm2583_vm12 = vcmask 785408   ;;  %vm2145_vm13 = vcmask 261120   ;;  %s4355_s30 = scalar_lea.hbm %s5457_s5, 32 }
  0x16   : > { %s4487_s9 = scalar_lea.vmem %s5452_s0, %s4151_s6  ;;  %vm2194_vm14 = vcmask 523264   ;;  %s215_s6 = sand.u32 1, %s4389_s19  }
  0x17   : > { %v4490_v0 = vld [vmem:[%s4487_s9 + $0x40] sm:$0xff]  ;;  %v4493_v1 = vld [vmem:[%s4487_s9 + $0x48] sm:$0xff]  ;;  %v4496_v2 = vld [vmem:[%s4487_s9 + $0x58] sm:$0xff]  ;;  %s3487_s7 = sshll.u32 %s215_s6, 4  ;;  %s3408_s15 = scalar_lea.sflag [#allocation5], %s215_s6 }
  0x18   : > { %566 = vrot.lane.b32.xlu0 %v4490_v0, %s4399_s10  ;;  %568 = vrot.lane.b32.xlu1 %v4493_v1, %s4399_s10  ;;  %v393_v3 = vshrl.u32 %v4490_v0, 16  ;;  %v396_v4 = vshll.u32 %v4490_v0, 16  ;;  %v400_v5 = vshrl.u32 %v4493_v1, 16  ;;  %v403_v6 = vshll.u32 %v4493_v1, 16  ;;  %v4523_v15 = vld [vmem:[%s4487_s9 + $0x60] sm:$0xff]  ;;  %v4540_v23 = vld [vmem:[%s4487_s9 + $0x70] sm:$0xff] }
  0x19   : > { %v417_v7 = vshll.u32 %v4496_v2, 16  ;;  %v414_v13 = vshrl.u32 %v4496_v2, 16  ;;  %v424_v19 = vshll.u32 %v4523_v15, 16  ;;  %v421_v21 = vshrl.u32 %v4523_v15, 16  ;;  %v4543_v24 = vld [vmem:[%s4487_s9 + $0x50] sm:$0xff]  ;;  %v4555_v28 = vld [vmem:[%s4487_s9 + $0x68] sm:$0xff] }
  0x1a   : > { %v499_v8 = vrot.slane %v396_v4, 1  ;;  %v501_v9 = vrot.slane %v403_v6, 1  ;;  %v438_v26 = vshll.u32 %v4540_v23, 16  ;;  %570 = vrot.lane.b32.xlu2 %v4543_v24, %s4399_s10  ;;  %v410_v27 = vshll.u32 %v4543_v24, 16  ;;  %v4566_v34 = vld [vmem:[%s4487_s9 + $0x78] sm:$0xff]  ;;  %v4585_v42 = vld [vmem:[%s4487_s9] sm:$0xff] }
  0x1b   : > { %v505_v14 = vrot.slane %v417_v7, 1  ;;  %v507_v22 = vrot.slane %v424_v19, 1  ;;  %v407_v29 = vshrl.u32 %v4543_v24, 16  ;;  %v435_v32 = vshrl.u32 %v4540_v23, 16  ;;  %v4596_v45 = vld [vmem:[%s4487_s9 + $0x8] sm:$0xff]  ;;  %v4604_v49 = vld [vmem:[%s4487_s9 + $0x10] sm:$0xff] }
  0x1c   : > { %v500_v11 = vor.u32 %v499_v8, %v393_v3  ;;  %v502_v12 = vor.u32 %v501_v9, %v400_v5  ;;  %v503_v30 = vrot.slane %v410_v27, 1  ;;  %v511_v33 = vrot.slane %v438_v26, 1  ;;  %v4618_v55 = vld [vmem:[%s4487_s9 + $0x20] sm:$0xff]  ;;  %v4629_v61 = vld [vmem:[%s4487_s9 + $0x18] sm:$0xff]  ;;  %s217_s8 = scalar_lea.vmem [#allocation4], %s3487_s7 }
  0x1d   : > { %v506_v18 = vor.u32 %v505_v14, %v414_v13  ;;  %v508_v25 = vor.u32 %v507_v22, %v421_v21  ;;  %v445_v38 = vshll.u32 %v4566_v34, 16  ;;  %v442_v40 = vshrl.u32 %v4566_v34, 16  ;;  %v4654_v22 = vld [vmem:[%s4487_s9 + $0x38] sm:$0xff]  ;;  %s3421_s13 = sshll.u32 %s217_s8, 4  ;;  %s3422_s13 = int_to_ptr.vmem [resolvable:$true] %s3421_s13 }
  0x1e   : > { %v542_v16 = vsel %vm4511_vm2, %v500_v11, 0  ;;  %v543_v17 = vsel %vm4511_vm2, %v502_v12, 0  ;;  %v504_v35 = vor.u32 %v503_v30, %v407_v29  ;;  %v512_v37 = vor.u32 %v511_v33, %v435_v32  ;;  %v4637_v11 = vld [vmem:[%s4487_s9 + $0x28] sm:$0xff]  ;;  %v4665_v30 = vld [vmem:[%s4487_s9 + $0x30] sm:$0xff]  ;;  %s4285_s9 = sshll.u32 %s4455_s22, 4 }
  0x1f   : > { %v545_v20 = vsel %vm4511_vm2, %v506_v18, 0  ;;  %v546_v31 = vsel %vm4511_vm2, %v508_v25, 0  ;;  %v513_v41 = vrot.slane %v445_v38, 1  ;;  %v340_v44 = vshll.u32 %v4585_v42, 16  ;;  %s3419_s12 = scalar_lea.hbm %s5457_s5, %s4285_s9 }
  0x20   : > { %614 = vrot.lane.b32.xlu0 %v542_v16, %s4400_s11  ;;  %616 = vrot.lane.b32.xlu1 %v543_v17, %s4400_s11  ;;  %v544_v36 = vsel %vm4511_vm2, %v504_v35, 0  ;;  %v548_v39 = vsel %vm4511_vm2, %v512_v37, 0  ;;  %v337_v47 = vshrl.u32 %v4585_v42, 16  ;;  %v354_v51 = vshll.u32 %v4604_v49, 16  ;;  %s3423_s14 = sshll.u32 %s3419_s12, 4  ;;  %s3424_s14 = int_to_ptr.hbm [resolvable:$true] %s3423_s14 }
  0x21   : > { %v514_v43 = vor.u32 %v513_v41, %v442_v40  ;;  %v483_v48 = vrot.slane %v340_v44, 1  ;;  %v351_v53 = vshrl.u32 %v4604_v49, 16  ;;  %v428_v56 = vshrl.u32 %v4555_v28, 16  ;;  %s4349_s23 = sshra.s32 %s3424_s14, 4  ;;  %s4350_s23 = int_to_ptr.hbm [resolvable:$true] %s4349_s23 }
  0x22   : > { %618 = vrot.lane.b32.xlu2 %v544_v36, %s4400_s11  ;;  %v487_v54 = vrot.slane %v354_v51, 1  ;;  %v431_v57 = vshll.u32 %v4555_v28, 16  ;;  %v368_v59 = vshll.u32 %v4618_v55, 16  ;;  %v365_v8 = vshrl.u32 %v4618_v55, 16  ;;  %s4351_s25 = scalar_lea.hbm %s4350_s23, 16  ;;  %p4356_p0 = scmp.lt.s32.totalorder %s4350_s23, %s5457_s5 }
  0x23   : > { %v549_v46 = vsel %vm4511_vm2, %v514_v43, 0  ;;  %v484_v50 = vor.u32 %v483_v48, %v337_v47  ;;  %v375_v16 = vshll.u32 %v4637_v11, 16  ;;  %v372_v18 = vshrl.u32 %v4637_v11, 16  ;;  %v3622_v48 = vld [vmem:[%s5453_s1 + $0x8] sm:$0xf]  ;;  %p4352_p11 = scmp.ne.s32.totalorder %s4350_s23, %s4351_s25  ;;  %p4357_p1 = scmp.lt.s32.totalorder %s4355_s30, %s4351_s25 }
  0x24   : > { %v488_v58 = vor.u32 %v487_v54, %v351_v53  ;;  %v509_v60 = vrot.slane %v431_v57, 1  ;;  %v491_v9 = vrot.slane %v368_v59, 1  ;;  %v386_v33 = vshrl.u32 %v4654_v22, 16 }
  0x25   : > { %v534_v52 = vsel %vm4511_vm2, %v484_v50, 0  ;;  %v344_v41 = vshrl.u32 %v4596_v45, 16  ;;  %v4201_v50 = vld [vmem:[%s5453_s1 + $0x8] sm:$0x30]  ;;  %v395_v24 = vrot.slane %v393_v3, 7  ;;  %v416_v1 = vrot.slane %v414_v13, 7  ;;  %p4353_p12 = pnand %p4352_p11, %p4472_p5  ;;  %p4358_p2 = por %p4357_p1, %p4356_p0 }
  0x26   : > { %v510_v62 = vor.u32 %v509_v60, %v428_v56  ;;  %v536_v63 = vsel %vm4511_vm2, %v488_v58, 0  ;;  %v492_v14 = vor.u32 %v491_v9, %v365_v8  ;;  %v409_v58 = vrot.slane %v407_v29, 7 }
  0x27   : > { %v430_v60 = vrot.slane %v428_v56, 7  ;;  %p4354_p13 = pneg %p4353_p12 }
  0x28   : > { %572 = vrot.lane.b32.xlu0 %v4496_v2, %s4399_s10  ;;  %620 = vrot.lane.b32.xlu1 %v545_v20, %s4400_s11  ;;  %v547_v12 = vsel %vm4511_vm2, %v510_v62, 0  ;;  %v538_v17 = vsel %vm4511_vm2, %v492_v14, 0  ;;  %v493_v20 = vrot.slane %v375_v16, 1  ;;  %v3792_v62 = vld [vmem:[%s5453_s1 + $0x10] sm:$0xf]  ;;  %v412_v29 = vor.u32 %v410_v27, %v409_v58 }
  0x29   : > { %v4704_v56 = vor.u32 %v431_v57, %v430_v60  ;;  %v402_v14 = vrot.slane %v400_v5, 7  ;;  %p4359_p3 = pnand %p4358_p2, %p4354_p13 }
  0x2a   : > { %574 = vrot.lane.b32.xlu2 %v4523_v15, %s4399_s10  ;;  %v494_v25 = vor.u32 %v493_v20, %v372_v18 }
  0x2b   : > { %v405_v5 = vor.u32 %v403_v6, %v402_v14 }
  0x30   : > { %622 = vrot.lane.b32.xlu0 %v546_v31, %s4400_s11  ;;  %576 = vrot.lane.b32.xlu1 %v4555_v28, %s4399_s10  ;;  %v389_v28 = vshll.u32 %v4654_v22, 16  ;;  %v539_v31 = vsel %vm4511_vm2, %v494_v25, 0  ;;  %v477_v25 = vsel %vm4708_vm6, 0, %v412_v29 }
  0x32   : > { %624 = vrot.lane.b32.xlu2 %v547_v12, %s4400_s11  ;;  %v497_v35 = vrot.slane %v389_v28, 1 }
  0x34   : > { %v498_v36 = vor.u32 %v497_v35, %v386_v33  ;;  %v398_v35 = vor.u32 %v396_v4, %v395_v24 }
  0x36   : > { %v541_v37 = vsel %vm4511_vm2, %v498_v36, 0  ;;  %v475_v6 = vsel %vm4708_vm6, 0, %v398_v35 }
  0x38   : > { %578 = vrot.lane.b32.xlu0 %v4540_v23, %s4399_s10  ;;  %626 = vrot.lane.b32.xlu1 %v548_v39, %s4400_s11  ;;  %v347_v39 = vshll.u32 %v4596_v45, 16 }
  0x3a   : > { %580 = vrot.lane.b32.xlu2 %v4566_v34, %s4399_s10  ;;  %v485_v43 = vrot.slane %v347_v39, 1 }
  0x40   : > { %628 = vrot.lane.b32.xlu0 %v549_v46, %s4400_s11  ;;  %552 = vrot.lane.b32.xlu1 %v4596_v45, %s4399_s10  ;;  %v486_v46 = vor.u32 %v485_v43, %v344_v41  ;;  %v476_v43 = vsel %vm4708_vm6, 0, %v405_v5 }
  0x42   : > { %v535_v54 = vsel %vm4511_vm2, %v486_v46, 0 }
  0x43   : > { %600 = vrot.lane.b32.xlu2 %v535_v54, %s4400_s11 }
  0x48   : > { %550 = vrot.lane.b32.xlu0 %v4585_v42, %s4399_s10  ;;  %598 = vrot.lane.b32.xlu1 %v534_v52, %s4400_s11  ;;  %v3623_v52 = vor.u32 %v4201_v50, %v3622_v48  ;;  %v346_v48 = vrot.slane %v344_v41, 7 }
  0x4a   : > { %v1068_v45 = vsel %vm1066_vm3, %v3623_v52, 0  ;;  %v4735_v41 = vor.u32 %v347_v39, %v346_v48 }
  0x4b   : > { %4286 = vmatpush.bf16.msra.mxu2 %v1068_v45  ;;  %1077 = vmatpush.bf16.msra.mxu0 %v1068_v45  ;;  %v419_v45 = vor.u32 %v417_v7, %v416_v1  ;;  %v361_v7 = vshll.u32 %v4629_v61, 16 }
  0x4c   : > { %554 = vrot.lane.b32.xlu2 %v4604_v49, %s4399_s10 }
  0x4d   : > { %v478_v39 = vsel %vm4708_vm6, 0, %v419_v45 }
  0x50   : > { %602 = vrot.lane.b32.xlu0 %v536_v63, %s4400_s11  ;;  %556 = vrot.lane.b32.xlu1 %v4629_v61, %s4399_s10  ;;  %v4218_v63 = vld [vmem:[%s5453_s1 + $0x10] sm:$0x30] }
  0x51   : > { %v3793_v9 = vor.u32 %v4218_v63, %v3792_v62 }
  0x53   : > { %v1554_v20 = vsel %vm1066_vm3, %v3793_v9, 0 }
  0x54   : > { %1563 = vmatpush.bf16.msrb.mxu2 %v1554_v20 }
  0x58   : > { %558 = vrot.lane.b32.xlu0 %v4618_v55, %s4399_s10  ;;  %606 = vrot.lane.b32.xlu1 %v538_v17, %s4400_s11 }
  0x60   : > { %608 = vrot.lane.b32.xlu0 %v539_v31, %s4400_s11  ;;  %562 = vrot.lane.b32.xlu1 %v4665_v30, %s4399_s10 }
  0x68   : > { %564 = vrot.lane.b32.xlu0 %v4654_v22, %s4399_s10  ;;  %612 = vrot.lane.b32.xlu1 %v541_v37, %s4400_s11 }
  0x74   : > { %v571_v12 = vpop.permute.xlu2 %570 }
  0x75   : > { %v663_v27 = vsel %vm630_vm7, %v477_v25, %v571_v12 }
  0x7c   : > { %v619_v36 = vpop.permute.xlu2 %618 }
  0x7d   : > { %v701_v37 = vsel %vm679_vm8, %v663_v27, %v619_v36 }
  0x7e   : > { %v754_v46 = vunpack.c.l.b16 %v701_v37  ;;  %v755_v3 = vunpack.c.h.b16 %v701_v37 }
  0x80   : > { %v786_v50 = vpack.c.b16 %v754_v46, %v754_v46  ;;  %v787_v52 = vpack.c.b16 %v755_v3, %v755_v3  ;;  %v437_v3 = vrot.slane %v435_v32, 7 }
  0x82   : > { %851 = vst.msk [vmem:[#allocation2 + $0x58] sm:$0xf] %vm712_vm9, %v786_v50 }
  0x83   : > { %852 = vst.msk [vmem:[#allocation2 + $0x5c] sm:$0xf] %vm712_vm9, %v787_v52  ;;  %v440_v52 = vor.u32 %v438_v26, %v437_v3 }
  0x84   : > { %v575_v15 = vpop.permute.xlu2 %574 }
  0x85   : > { %v481_v32 = vsel %vm4708_vm6, 0, %v440_v52 }
  0x8a   : > { %v567_v57 = vpop.permute.xlu0 %566  ;;  %v569_v31 = vpop.permute.xlu1 %568 }
  0x8b   : > { %v660_v0 = vsel %vm630_vm7, %v476_v43, %v569_v31  ;;  %v657_v4 = vsel %vm630_vm7, %v475_v6, %v567_v57  ;;  %v358_v57 = vshrl.u32 %v4629_v61, 16  ;;  %v489_v31 = vrot.slane %v361_v7, 1 }
  0x8d   : > { %v490_v37 = vor.u32 %v489_v31, %v358_v57  ;;  %v360_v50 = vrot.slane %v358_v57, 7 }
  0x8f   : > { %v537_v1 = vsel %vm4511_vm2, %v490_v37, 0 }
  0x90   : > { %604 = vrot.lane.b32.xlu2 %v537_v1, %s4400_s11  ;;  %v367_v1 = vrot.slane %v365_v8, 7  ;;  %v4184_v8 = vld [vmem:[%s5453_s1] sm:$0x30] }
  0x92   : > { %v615_v54 = vpop.permute.xlu0 %614  ;;  %v617_v58 = vpop.permute.xlu1 %616 }
  0x93   : > { %v697_v13 = vsel %vm679_vm8, %v657_v4, %v615_v54  ;;  %v699_v60 = vsel %vm679_vm8, %v660_v0, %v617_v58  ;;  %v4761_v0 = vor.u32 %v361_v7, %v360_v50 }
  0x94   : > { %v750_v62 = vunpack.c.l.b16 %v697_v13  ;;  %v751_v63 = vunpack.c.h.b16 %v697_v13  ;;  %v752_v29 = vunpack.c.l.b16 %v699_v60  ;;  %v753_v9 = vunpack.c.h.b16 %v699_v60 }
  0x95   : > { %v423_v13 = vrot.slane %v421_v21, 7 }
  0x96   : > { %v782_v12 = vpack.c.b16 %v750_v62, %v750_v62  ;;  %v783_v14 = vpack.c.b16 %v751_v63, %v751_v63  ;;  %v784_v20 = vpack.c.b16 %v752_v29, %v752_v29  ;;  %v785_v25 = vpack.c.b16 %v753_v9, %v753_v9 }
  0x97   : > { %v339_v63 = vrot.slane %v337_v47, 7  ;;  %v379_v29 = vshrl.u32 %v4665_v30, 16 }
  0x98   : > { %847 = vst.msk [vmem:[#allocation2 + $0x48] sm:$0xf] %vm712_vm9, %v782_v12  ;;  %560 = vrot.lane.b32.xlu2 %v4637_v11, %s4399_s10  ;;  %v426_v12 = vor.u32 %v424_v19, %v423_v13 }
  0x99   : > { %848 = vst.msk [vmem:[#allocation2 + $0x4c] sm:$0xf] %vm712_vm9, %v783_v14  ;;  %v381_v47 = vrot.slane %v379_v29, 7  ;;  %v342_v19 = vor.u32 %v340_v44, %v339_v63 }
  0x9a   : > { %849 = vst.msk [vmem:[#allocation2 + $0x50] sm:$0xf] %vm712_vm9, %v784_v20  ;;  %v573_v24 = vpop.permute.xlu0 %572  ;;  %v621_v2 = vpop.permute.xlu1 %620  ;;  %v479_v20 = vsel %vm4708_vm6, 0, %v426_v12 }
  0x9b   : > { %850 = vst.msk [vmem:[#allocation2 + $0x54] sm:$0xf] %vm712_vm9, %v785_v25  ;;  %v666_v5 = vsel %vm630_vm7, %v478_v39, %v573_v24  ;;  %v382_v25 = vshll.u32 %v4665_v30, 16  ;;  %v669_v39 = vsel %vm630_vm7, %v479_v20, %v575_v15 }
  0x9c   : > { %v703_v27 = vsel %vm679_vm8, %v666_v5, %v621_v2 }
  0x9d   : > { %v756_v35 = vunpack.c.l.b16 %v703_v27  ;;  %v757_v36 = vunpack.c.h.b16 %v703_v27  ;;  %v4791_v24 = vor.u32 %v382_v25, %v381_v47  ;;  %v467_v27 = vsel %vm4708_vm6, 0, %v342_v19 }
  0x9e   : > { %v495_v20 = vrot.slane %v382_v25, 1  ;;  %v4401_v25 = vmov 0  }
  0x9f   : > { %v788_v43 = vpack.c.b16 %v756_v35, %v756_v35  ;;  %v789_v46 = vpack.c.b16 %v757_v36, %v757_v36  ;;  %713 = vst.msk [vmem:[#allocation2] sm:$0xf] %vm712_vm9, %v4401_v25  ;;  %v473_v30 = vsel %vm4708_vm6, 0, %v4791_v24  ;;  %v468_v24 = vsel %vm4708_vm6, 0, %v4735_v41 }
  0xa0   : > { %v4193_v48 = vld [vmem:[#allocation2 + $0x48] sm:$0xff]  ;;  %714 = vst.msk [vmem:[#allocation2 + $0x4] sm:$0xf] %vm712_vm9, %v4401_v25 }
  0xa1   : > { %853 = vst.msk [vmem:[#allocation2 + $0x60] sm:$0xf] %vm712_vm9, %v788_v43  ;;  %3632 = vmatmul.msk.bf16.vlgmr.msra.gmra.mxu2 %vm1017_vm10, %v4193_v48 }
  0xa2   : > { %854 = vst.msk [vmem:[#allocation2 + $0x64] sm:$0xf] %vm712_vm9, %v789_v46  ;;  %v623_v61 = vpop.permute.xlu0 %622  ;;  %v577_v6 = vpop.permute.xlu1 %576  ;;  %v4194_v9 = vld [vmem:[#allocation2 + $0x50] sm:$0xff]  ;;  %v480_v46 = vsel %vm4708_vm6, 0, %v4704_v56  ;;  %v3706_v56 = vld [vmem:[%s5453_s1] sm:$0xf] }
  0xa3   : > { %v705_v2 = vsel %vm679_vm8, %v669_v39, %v623_v61  ;;  %v4195_v61 = vld [vmem:[#allocation2 + $0x58] sm:$0xff]  ;;  %v672_v50 = vsel %vm630_vm7, %v480_v46, %v577_v6  ;;  %v370_v6 = vor.u32 %v368_v59, %v367_v1  ;;  %716 = vst.msk [vmem:[#allocation2 + $0x88] sm:$0xf] %vm712_vm9, %v4401_v25 }
  0xa4   : > { %v758_v7 = vunpack.c.l.b16 %v705_v2  ;;  %v759_v5 = vunpack.c.h.b16 %v705_v2  ;;  %v496_v2 = vor.u32 %v495_v20, %v379_v29  ;;  %717 = vst.msk [vmem:[#allocation2 + $0x8c] sm:$0xf] %vm712_vm9, %v4401_v25 }
  0xa5   : > { %v471_v63 = vsel %vm4708_vm6, 0, %v370_v6  ;;  %2228 = vst.msk [vmem:[#allocation3] sm:$0xf] %vm2227_vm11, %v4401_v25 }
  0xa6   : > { %v790_v57 = vpack.c.b16 %v758_v7, %v758_v7  ;;  %v791_v31 = vpack.c.b16 %v759_v5, %v759_v5  ;;  %2229 = vst.msk [vmem:[#allocation3 + $0x4] sm:$0xf] %vm2227_vm11, %v4401_v25 }
  0xa7   : > { %v4168_v41 = vld [vmem:[#allocation2] sm:$0xff]  ;;  %2231 = vst.msk [vmem:[#allocation3 + $0x88] sm:$0xf] %vm2227_vm11, %v4401_v25 }
  0xa8   : > { %855 = vst.msk [vmem:[#allocation2 + $0x68] sm:$0xf] %vm712_vm9, %v790_v57 }
  0xa9   : > { %856 = vst.msk [vmem:[#allocation2 + $0x6c] sm:$0xf] %vm712_vm9, %v791_v31  ;;  %v4196_v7 = vld [vmem:[#allocation2 + $0x60] sm:$0xff]  ;;  %v388_v31 = vrot.slane %v386_v33, 7 }
  0xaa   : > { %v579_v4 = vpop.permute.xlu0 %578  ;;  %v627_v54 = vpop.permute.xlu1 %626  ;;  %2232 = vst.msk [vmem:[#allocation3 + $0x8c] sm:$0xf] %vm2227_vm11, %v4401_v25 }
  0xab   : > { %v675_v58 = vsel %vm630_vm7, %v481_v32, %v579_v4  ;;  %v625_v4 = vpop.permute.xlu2 %624 }
  0xac   : > { %v709_v60 = vsel %vm679_vm8, %v675_v58, %v627_v54  ;;  %v707_v54 = vsel %vm679_vm8, %v672_v50, %v625_v4  ;;  %v3707_v58 = vor.u32 %v4184_v8, %v3706_v56 }
  0xad   : > { %v762_v45 = vunpack.c.l.b16 %v709_v60  ;;  %v763_v23 = vunpack.c.h.b16 %v709_v60  ;;  %v760_v13 = vunpack.c.l.b16 %v707_v54  ;;  %v761_v60 = vunpack.c.h.b16 %v707_v54 }
  0xaf   : > { %v794_v26 = vpack.c.b16 %v762_v45, %v762_v45  ;;  %v795_v62 = vpack.c.b16 %v763_v23, %v763_v23  ;;  %v1293_v45 = vsel %vm1066_vm3, %v3707_v58, 0  ;;  %v444_v23 = vrot.slane %v442_v40, 7 }
  0xb0   : > { %4287 = vmatpush.bf16.msra.mxu3 %v1293_v45  ;;  %1302 = vmatpush.bf16.msra.mxu1 %v1293_v45  ;;  %v353_v58 = vrot.slane %v351_v53, 7 }
  0xb1   : > { %859 = vst.msk [vmem:[#allocation2 + $0x78] sm:$0xf] %vm712_vm9, %v794_v26  ;;  %3633 = vmatmul.msk.bf16.gmra.mxu2 %vm1017_vm10, %v4194_v9  ;;  %v792_v26 = vpack.c.b16 %v760_v13, %v760_v13  ;;  %v447_v12 = vor.u32 %v445_v38, %v444_v23  ;;  %v540_v38 = vsel %vm4511_vm2, %v496_v2, 0  ;;  %v4197_v13 = vld [vmem:[#allocation2 + $0x68] sm:$0xff] }
  0xb2   : > { %860 = vst.msk [vmem:[#allocation2 + $0x7c] sm:$0xf] %vm712_vm9, %v795_v62  ;;  %v4778_v21 = vpop.permute.xlu0 %628  ;;  %v4781_v14 = vpop.permute.xlu1 %552  ;;  %v793_v62 = vpack.c.b16 %v761_v60, %v761_v60  ;;  %610 = vrot.lane.b32.xlu2 %v540_v38, %s4400_s11  ;;  %v356_v23 = vor.u32 %v354_v51, %v353_v58 }
  0xb3   : > { %857 = vst.msk [vmem:[#allocation2 + $0x70] sm:$0xf] %vm712_vm9, %v792_v26  ;;  %v482_v19 = vsel %vm4708_vm6, 0, %v447_v12  ;;  %v581_v39 = vpop.permute.xlu2 %580  ;;  %v636_v46 = vsel %vm630_vm7, %v468_v24, %v4781_v14  ;;  %3708 = vmatmul.msk.bf16.vlgmr.msra.gmra.mxu1 %vm1017_vm10, %v4168_v41 }
  0xb4   : > { %858 = vst.msk [vmem:[#allocation2 + $0x74] sm:$0xf] %vm712_vm9, %v793_v62  ;;  %v678_v5 = vsel %vm630_vm7, %v482_v19, %v581_v39  ;;  %v469_v53 = vsel %vm4708_vm6, 0, %v356_v23  ;;  %v4177_v39 = vld [vmem:[#allocation2 + $0x48] sm:$0xff] }
  0xb5   : > { %v711_v34 = vsel %vm679_vm8, %v678_v5, %v4778_v21 }
  0xb6   : > { %v764_v29 = vunpack.c.l.b16 %v711_v34 }
  0xba   : > { %v551_v35 = vpop.permute.xlu0 %550  ;;  %v599_v36 = vpop.permute.xlu1 %598 }
  0xbb   : > { %v633_v42 = vsel %vm630_vm7, %v467_v27, %v551_v35  ;;  %v765_v35 = vunpack.c.h.b16 %v711_v34  ;;  %v4198_v49 = vld [vmem:[#allocation2 + $0x70] sm:$0xff] }
  0xbc   : > { %v681_v44 = vsel %vm679_vm8, %v633_v42, %v599_v36  ;;  %v796_v36 = vpack.c.b16 %v764_v29, %v764_v29  ;;  %v374_v29 = vrot.slane %v372_v18, 7 }
  0xbd   : > { %v734_v37 = vunpack.c.l.b16 %v681_v44  ;;  %v735_v43 = vunpack.c.h.b16 %v681_v44  ;;  %v797_v42 = vpack.c.b16 %v765_v35, %v765_v35 }
  0xbe   : > { %861 = vst.msk [vmem:[#allocation2 + $0x80] sm:$0xf] %vm712_vm9, %v796_v36  ;;  %v377_v35 = vor.u32 %v375_v16, %v374_v29 }
  0xbf   : > { %v766_v3 = vpack.c.b16 %v734_v37, %v734_v37  ;;  %v767_v48 = vpack.c.b16 %v735_v43, %v735_v43  ;;  %v391_v43 = vor.u32 %v389_v28, %v388_v31  ;;  %862 = vst.msk [vmem:[#allocation2 + $0x84] sm:$0xf] %vm712_vm9, %v797_v42 }
  0xc0   : > { %v472_v42 = vsel %vm4708_vm6, 0, %v377_v35 }
  0xc1   : > { %831 = vst.msk [vmem:[#allocation2 + $0x8] sm:$0xf] %vm712_vm9, %v766_v3  ;;  %3634 = vmatmul.msk.bf16.gmra.mxu2 %vm1017_vm10, %v4195_v61  ;;  %v474_v3 = vsel %vm4708_vm6, 0, %v391_v43  ;;  %v4179_v43 = vld [vmem:[#allocation2 + $0x58] sm:$0xff] }
  0xc2   : > { %832 = vst.msk [vmem:[#allocation2 + $0xc] sm:$0xf] %vm712_vm9, %v767_v48  ;;  %v4809_v52 = vpop.permute.xlu0 %602  ;;  %v4811_v32 = vpop.permute.xlu1 %556 }
  0xc3   : > { %v601_v48 = vpop.permute.xlu2 %600 }
  0xc4   : > { %v683_v22 = vsel %vm679_vm8, %v636_v46, %v601_v48 }
  0xc5   : > { %v736_v61 = vunpack.c.l.b16 %v683_v22  ;;  %v737_v50 = vunpack.c.h.b16 %v683_v22 }
  0xc7   : > { %v768_v4 = vpack.c.b16 %v736_v61, %v736_v61  ;;  %v769_v8 = vpack.c.b16 %v737_v50, %v737_v50 }
  0xc9   : > { %v4185_v44 = vld [vmem:[#allocation2 + $0x8] sm:$0xff]  ;;  %833 = vst.msk [vmem:[#allocation2 + $0x10] sm:$0xf] %vm712_vm9, %v768_v4 }
  0xca   : > { %v559_v55 = vpop.permute.xlu0 %558  ;;  %v607_v59 = vpop.permute.xlu1 %606  ;;  %3624 = vmatmul.msk.bf16.vlgmr.msra.gmra.mxu0 %vm1017_vm10, %v4185_v44  ;;  %834 = vst.msk [vmem:[#allocation2 + $0x14] sm:$0xf] %vm712_vm9, %v769_v8 }
  0xcb   : > { %v645_v9 = vsel %vm630_vm7, %v471_v63, %v559_v55  ;;  %v555_v26 = vpop.permute.xlu2 %554  ;;  %v4169_v63 = vld [vmem:[#allocation2 + $0x8] sm:$0xff] }
  0xcc   : > { %v689_v40 = vsel %vm679_vm8, %v645_v9, %v607_v59  ;;  %v639_v62 = vsel %vm630_vm7, %v469_v53, %v555_v26  ;;  %3709 = vmatmul.msk.bf16.gmra.mxu1 %vm1017_vm10, %v4169_v63 }
  0xcd   : > { %v742_v47 = vunpack.c.l.b16 %v689_v40  ;;  %v743_v15 = vunpack.c.h.b16 %v689_v40  ;;  %v685_v55 = vsel %vm679_vm8, %v639_v62, %v4809_v52  ;;  %v4182_v62 = vld [vmem:[#allocation2 + $0x70] sm:$0xff] }
  0xce   : > { %v738_v9 = vunpack.c.l.b16 %v685_v55  ;;  %v739_v12 = vunpack.c.h.b16 %v685_v55 }
  0xcf   : > { %v774_v27 = vpack.c.b16 %v742_v47, %v742_v47  ;;  %v775_v57 = vpack.c.b16 %v743_v15, %v743_v15  ;;  %v470_v15 = vsel %vm4708_vm6, 0, %v4761_v0 }
  0xd0   : > { %v770_v40 = vpack.c.b16 %v738_v9, %v738_v9  ;;  %v771_v47 = vpack.c.b16 %v739_v12, %v739_v12  ;;  %v642_v19 = vsel %vm630_vm7, %v470_v15, %v4811_v32  ;;  %v4178_v32 = vld [vmem:[#allocation2 + $0x50] sm:$0xff]  ;;  %v4183_v9 = vld [vmem:[#allocation2 + $0x78] sm:$0xff] }
  0xd1   : > { %839 = vst.msk [vmem:[#allocation2 + $0x28] sm:$0xf] %vm712_vm9, %v774_v27  ;;  %3635 = vmatmul.msk.bf16.gmra.mxu2 %vm1017_vm10, %v4196_v7  ;;  %v4186_v59 = vld [vmem:[#allocation2 + $0x10] sm:$0xff] }
  0xd2   : > { %840 = vst.msk [vmem:[#allocation2 + $0x2c] sm:$0xf] %vm712_vm9, %v775_v57  ;;  %v4855_v21 = vpop.permute.xlu0 %608  ;;  %v563_v33 = vpop.permute.xlu1 %562  ;;  %v4170_v52 = vld [vmem:[#allocation2 + $0x10] sm:$0xff]  ;;  %v4199_v57 = vld [vmem:[#allocation2 + $0x78] sm:$0xff] }
  0xd3   : > { %v4861_v37 = vsel %vm630_vm7, %v473_v30, %v563_v33  ;;  %835 = vst.msk [vmem:[#allocation2 + $0x18] sm:$0xf] %vm712_vm9, %v770_v40  ;;  %v4200_v30 = vld [vmem:[#allocation2 + $0x80] sm:$0xff] }
  0xd4   : > { %836 = vst.msk [vmem:[#allocation2 + $0x1c] sm:$0xf] %vm712_vm9, %v771_v47 }
  0xd9   : > { %v4189_v44 = vld [vmem:[#allocation2 + $0x28] sm:$0xff] }
  0xda   : > { %v565_v28 = vpop.permute.xlu0 %564  ;;  %v613_v1 = vpop.permute.xlu1 %612  ;;  %3625 = vmatmul.msk.bf16.gmra.mxu0 %vm1017_vm10, %v4186_v59  ;;  %v4205_v55 = vld [vmem:[#allocation2 + $0x28] sm:$0xff] }
  0xdb   : > { %v654_v56 = vsel %vm630_vm7, %v474_v3, %v565_v28  ;;  %v4187_v51 = vld [vmem:[#allocation2 + $0x18] sm:$0xff]  ;;  %v4202_v3 = vld [vmem:[#allocation2 + $0x10] sm:$0xff]  ;;  %v4180_v28 = vld [vmem:[#allocation2 + $0x60] sm:$0xff] }
  0xdc   : > { %v695_v14 = vsel %vm679_vm8, %v654_v56, %v613_v1  ;;  %3710 = vmatmul.msk.bf16.gmra.mxu1 %vm1017_vm10, %v4170_v52  ;;  %v4171_v0 = vld [vmem:[#allocation2 + $0x18] sm:$0xff] }
  0xdd   : > { %v748_v6 = vunpack.c.l.b16 %v695_v14  ;;  %v749_v54 = vunpack.c.h.b16 %v695_v14  ;;  %v4203_v4 = vld [vmem:[#allocation2 + $0x18] sm:$0xff] }
  0xdf   : > { %v780_v60 = vpack.c.b16 %v748_v6, %v748_v6  ;;  %v781_v45 = vpack.c.b16 %v749_v54, %v749_v54 }
  0xe1   : > { %845 = vst.msk [vmem:[#allocation2 + $0x40] sm:$0xf] %vm712_vm9, %v780_v60  ;;  %3636 = vmatmul.msk.bf16.gmra.mxu2 %vm1017_vm10, %v4197_v13 }
  0xe2   : > { %846 = vst.msk [vmem:[#allocation2 + $0x44] sm:$0xf] %vm712_vm9, %v781_v45 }
  0xe9   : > { %v4176_v20 = vld [vmem:[#allocation2 + $0x40] sm:$0xff] }
  0xea   : > { %3716 = vmatmul.msk.bf16.vlgmr.msra.gmra.mxu3 %vm1017_vm10, %v4176_v20  ;;  %3626 = vmatmul.msk.bf16.gmra.mxu0 %vm1017_vm10, %v4187_v51  ;;  %v605_v2 = vpop.permute.xlu2 %604  ;;  %v4192_v53 = vld [vmem:[#allocation2 + $0x40] sm:$0xff] }
  0xeb   : > { %v687_v7 = vsel %vm679_vm8, %v642_v19, %v605_v2  ;;  %v4208_v15 = vld [vmem:[#allocation2 + $0x40] sm:$0xff] }
  0xec   : > { %v740_v5 = vunpack.c.l.b16 %v687_v7  ;;  %v741_v27 = vunpack.c.h.b16 %v687_v7  ;;  %3711 = vmatmul.msk.bf16.gmra.mxu1 %vm1017_vm10, %v4171_v0 }
  0xee   : > { %v772_v34 = vpack.c.b16 %v740_v5, %v740_v5  ;;  %v773_v38 = vpack.c.b16 %v741_v27, %v741_v27 }
  0xf0   : > { %837 = vst.msk [vmem:[#allocation2 + $0x20] sm:$0xf] %vm712_vm9, %v772_v34 }
  0xf1   : > { %3637 = vmatmul.msk.bf16.gmra.mxu2 %vm1017_vm10, %v4198_v49  ;;  %838 = vst.msk [vmem:[#allocation2 + $0x24] sm:$0xf] %vm712_vm9, %v773_v38 }
  0xf2   : > { %v561_v33 = vpop.permute.xlu2 %560 }
  0xf3   : > { %v648_v24 = vsel %vm630_vm7, %v472_v42, %v561_v33  ;;  %v4988_v42 = vld [vmem:[%s5454_s2] ss:$0 sm:$0xff] }
  0xf4   : > { %v691_v46 = vsel %vm679_vm8, %v648_v24, %v4855_v21  ;;  %v4173_v21 = vld [vmem:[#allocation2 + $0x28] sm:$0xff] }
  0xf5   : > { %v744_v18 = vunpack.c.l.b16 %v691_v46  ;;  %v745_v41 = vunpack.c.h.b16 %v691_v46 }
  0xf7   : > { %v776_v11 = vpack.c.b16 %v744_v18, %v744_v18  ;;  %v777_v16 = vpack.c.b16 %v745_v41, %v745_v41 }
  0xf8   : > { %v4188_v31 = vld [vmem:[#allocation2 + $0x20] sm:$0xff] }
  0xf9   : > { %v4172_v36 = vld [vmem:[#allocation2 + $0x20] sm:$0xff]  ;;  %841 = vst.msk [vmem:[#allocation2 + $0x30] sm:$0xf] %vm712_vm9, %v776_v11 }
  0xfa   : > { %3717 = vmatmul.msk.bf16.gmra.mxu3 %vm1017_vm10, %v4177_v39  ;;  %3627 = vmatmul.msk.bf16.gmra.mxu0 %vm1017_vm10, %v4188_v31  ;;  %842 = vst.msk [vmem:[#allocation2 + $0x34] sm:$0xf] %vm712_vm9, %v777_v16  ;;  %v4204_v45 = vld [vmem:[#allocation2 + $0x20] sm:$0xff]  ;;  %v4210_v31 = vld [vmem:[#allocation2 + $0x50] sm:$0xff]  ;;  %v4262_v16 = vld [vmem:[%s5455_s3 + $0x58] sm:$0xff] }
  0xfb   : > { %2634 = vmatpush.bf16.msrb.mxu3 %v4262_v16 }
  0xfc   : > { %3712 = vmatmul.msk.bf16.gmra.mxu1 %vm1017_vm10, %v4172_v36 }
 0x101   : > { %3638 = vmatmul.msk.bf16.gmra.mxu2 %vm1017_vm10, %v4199_v57  ;;  %v4190_v22 = vld [vmem:[#allocation2 + $0x30] sm:$0xff]  ;;  %v4209_v57 = vld [vmem:[#allocation2 + $0x48] sm:$0xff] }
 0x102   : > { %v4174_v58 = vld [vmem:[#allocation2 + $0x30] sm:$0xff] }
 0x103   : > { %v4206_v20 = vld [vmem:[#allocation2 + $0x30] sm:$0xff] }
 0x10a   : > { %3718 = vmatmul.msk.bf16.gmra.mxu3 %vm1017_vm10, %v4178_v32  ;;  %3628 = vmatmul.msk.bf16.gmra.mxu0 %vm1017_vm10, %v4189_v44 }
 0x10c   : > { %3713 = vmatmul.msk.bf16.gmra.mxu1 %vm1017_vm10, %v4173_v21  ;;  %v611_v1 = vpop.permute.xlu2 %610  ;;  %v4211_v21 = vld [vmem:[#allocation2 + $0x58] sm:$0xff] }
 0x10d   : > { %v693_v61 = vsel %vm679_vm8, %v4861_v37, %v611_v1  ;;  %v4181_v37 = vld [vmem:[#allocation2 + $0x68] sm:$0xff] }
 0x10e   : > { %v746_v50 = vunpack.c.l.b16 %v693_v61  ;;  %v747_v56 = vunpack.c.h.b16 %v693_v61 }
 0x110   : > { %v778_v8 = vpack.c.b16 %v746_v50, %v746_v50  ;;  %v779_v6 = vpack.c.b16 %v747_v56, %v747_v56 }
 0x111   : > { %3639 = vmatmul.msk.bf16.gmra.mxu2 %vm1017_vm10, %v4200_v30 }
 0x112   : > { %843 = vst.msk [vmem:[#allocation2 + $0x38] sm:$0xf] %vm712_vm9, %v778_v8 }
 0x113   : > { %844 = vst.msk [vmem:[#allocation2 + $0x3c] sm:$0xf] %vm712_vm9, %v779_v6 }
 0x11a   : > { %3719 = vmatmul.msk.bf16.gmra.mxu3 %vm1017_vm10, %v4179_v43  ;;  %3629 = vmatmul.msk.bf16.gmra.mxu0 %vm1017_vm10, %v4190_v22  ;;  %v4191_v13 = vld [vmem:[#allocation2 + $0x38] sm:$0xff] }
 0x11b   : > { %v4175_v26 = vld [vmem:[#allocation2 + $0x38] sm:$0xff] }
 0x11c   : > { %3714 = vmatmul.msk.bf16.gmra.mxu1 %vm1017_vm10, %v4174_v58  ;;  %v4207_v49 = vld [vmem:[#allocation2 + $0x38] sm:$0xff]  ;;  %v4240_v58 = vld [vmem:[%s5455_s3 + $0x28] sm:$0xff] }
 0x11d   : > { %2887 = vmatpush.bf16.msrb.mxu0 %v4240_v58  ;;  %v4283_v58 = vld [vmem:[%s5455_s3 + $0x80] sm:$0xff] }
 0x121   : > { %3794 = vmatmul.msk.bf16.vlgmr.msrb.gmra.mxu2 %vm1017_vm10, %v4202_v3 }
 0x124   : > { %v4931_v48 = vpop.f32.mrf.mxu2 }
 0x12a   : > { %3720 = vmatmul.msk.bf16.gmra.mxu3 %vm1017_vm10, %v4180_v28  ;;  %3630 = vmatmul.msk.bf16.gmra.mxu0 %vm1017_vm10, %v4191_v13  ;;  %v4284_v13 = vld [vmem:[%s5455_s3 + $0x88] sm:$0xff] }
 0x12b   : > { %3186 = vmatpush.bf16.msrb.mxu1 %v4284_v13 }
 0x12c   : > { %v4938_v14 = vpop.f32.mrf.mxu2  ;;  %3715 = vmatmul.msk.bf16.gmra.mxu1 %vm1017_vm10, %v4175_v26 }
 0x12f   : > { %3187 = vmatpush.bf16.msrb.mxu1 %v4283_v58  ;;  %v4282_v58 = vld [vmem:[%s5455_s3 + $0x78] sm:$0xff] }
 0x130   : > { %v1304_v19 = vpop.f32.mrf.mxu1 }
 0x131   : > { %3795 = vmatmul.msk.bf16.gmra.mxu2 %vm1017_vm10, %v4203_v4 }
 0x133   : > { %3188 = vmatpush.bf16.msrb.mxu1 %v4282_v58 }
 0x134   : > { %v4943_v54 = vpop.f32.mrf.mxu2 }
 0x138   : > { %v1306_v5 = vpop.f32.mrf.mxu1 }
 0x13a   : > { %3721 = vmatmul.msk.bf16.gmra.mxu3 %vm1017_vm10, %v4181_v37  ;;  %3631 = vmatmul.msk.bf16.gmra.mxu0 %vm1017_vm10, %v4192_v53 }
 0x13c   : > { %v4948_v60 = vpop.f32.mrf.mxu2 }
 0x141   : > { %3796 = vmatmul.msk.bf16.gmra.mxu2 %vm1017_vm10, %v4204_v45 }
 0x144   : > { %v4951_v23 = vpop.f32.mrf.mxu2 }
 0x147   : > { %v1079_v39 = vpop.f32.mrf.mxu0 }
 0x148   : > { %v1305_v30 = vadd.f32 %v1304_v19, %v1079_v39 }
 0x149   : > { %v1309_v38 = vpop.f32.mrf.mxu1 }
 0x14a   : > { %3722 = vmatmul.msk.bf16.gmra.mxu3 %vm1017_vm10, %v4182_v62 }
 0x14c   : > { %v4956_v63 = vpop.f32.mrf.mxu2 }
 0x14f   : > { %v1081_v27 = vpop.f32.mrf.mxu0 }
 0x150   : > { %v1307_v24 = vadd.f32 %v1306_v5, %v1081_v27 }
 0x151   : > { %3797 = vmatmul.msk.bf16.gmra.mxu2 %vm1017_vm10, %v4205_v55  ;;  %v1311_v29 = vpop.f32.mrf.mxu1 }
 0x154   : > { %v4959_v59 = vpop.f32.mrf.mxu2 }
 0x157   : > { %v1084_v0 = vpop.f32.mrf.mxu0 }
 0x158   : > { %v1310_v1 = vadd.f32 %v1309_v38, %v1084_v0 }
 0x159   : > { %v1314_v43 = vpop.f32.mrf.mxu1 }
 0x15a   : > { %3723 = vmatmul.msk.bf16.gmra.mxu3 %vm1017_vm10, %v4183_v9 }
 0x15c   : > { %v4962_v12 = vpop.f32.mrf.mxu2 }
 0x15f   : > { %v1086_v35 = vpop.f32.mrf.mxu0 }
 0x160   : > { %v1312_v55 = vadd.f32 %v1311_v29, %v1086_v35 }
 0x161   : > { %3798 = vmatmul.msk.bf16.gmra.mxu2 %vm1017_vm10, %v4206_v20  ;;  %v1316_v56 = vpop.f32.mrf.mxu1 }
 0x164   : > { %v4965_v40 = vpop.f32.mrf.mxu2 }
 0x167   : > { %v1089_v46 = vpop.f32.mrf.mxu0 }
 0x168   : > { %v1315_v35 = vadd.f32 %v1314_v43, %v1089_v46 }
 0x16c   : > { %v4967_v47 = vpop.f32.mrf.mxu2 }
 0x16f   : > { %v1091_v37 = vpop.f32.mrf.mxu0 }
 0x170   : > { %v1317_v43 = vadd.f32 %v1316_v56, %v1091_v37  ;;  %v4213_v37 = vld [vmem:[#allocation2 + $0x68] sm:$0xff] }
 0x171   : > { %3799 = vmatmul.msk.bf16.gmra.mxu2 %vm1017_vm10, %v4207_v49 }
 0x174   : > { %v4970_v51 = vpop.f32.mrf.mxu2 }
 0x177   : > { %v1094_v27 = vpop.f32.mrf.mxu0 }
 0x17c   : > { %v4972_v52 = vpop.f32.mrf.mxu2 }
 0x181   : > { %3800 = vmatmul.msk.bf16.gmra.mxu2 %vm1017_vm10, %v4208_v15  ;;  %v1319_v15 = vpop.f32.mrf.mxu1 }
 0x184   : > { %v4975_v2 = vpop.f32.mrf.mxu2 }
 0x18c   : > { %v4977_v7 = vpop.f32.mrf.mxu2 }
 0x191   : > { %3801 = vmatmul.msk.bf16.gmra.mxu2 %vm1017_vm10, %v4209_v57 }
 0x194   : > { %v4980_v34 = vpop.f32.mrf.mxu2 }
 0x19c   : > { %v4982_v32 = vpop.f32.mrf.mxu2 }
 0x1a1   : > { %3802 = vmatmul.msk.bf16.gmra.mxu2 %vm1017_vm10, %v4210_v31  ;;  %v4212_v31 = vld [vmem:[#allocation2 + $0x60] sm:$0xff] }
 0x1a4   : > { %v1565_v33 = vpop.f32.mrf.mxu2 }
 0x1a5   : > { %v1645_v36 = vadd.f32 %v1565_v33, %v1305_v30 }
 0x1a7   : > { %v1681_v44 = vadd.f32 %v4988_v42, %v1645_v36 }
 0x1a9   : > { %v1713_v41 = vmax.f32 %v1681_v44, 0.0 }
 0x1ab   : > { %v1745_v22 = vpack.c.bf16 %v1713_v41, %v1713_v41  ;;  %v4261_v41 = vld [vmem:[%s5455_s3 + $0x50] sm:$0xff] }
 0x1ac   : > { %v1567_v18 = vpop.f32.mrf.mxu2  ;;  %2635 = vmatpush.bf16.msrb.mxu3 %v4261_v41  ;;  %v4260_v41 = vld [vmem:[%s5455_s3 + $0x48] sm:$0xff] }
 0x1ad   : > { %v1646_v11 = vadd.f32 %v1567_v18, %v1307_v24  ;;  %v1809_v4 = vunpack.c.l.b16 %v1745_v22 }
 0x1af   : > { %v1682_v3 = vadd.f32 %v4988_v42, %v1646_v11  ;;  %v1321_v11 = vpop.f32.mrf.mxu1 }
 0x1b0   : > { %2636 = vmatpush.bf16.msrb.mxu3 %v4260_v41 }
 0x1b1   : > { %v1714_v28 = vmax.f32 %v1682_v3, 0.0  ;;  %3803 = vmatmul.msk.bf16.gmra.mxu2 %vm1017_vm10, %v4211_v21  ;;  %v1096_v3 = vpop.f32.mrf.mxu0 }
 0x1b3   : > { %v1746_v61 = vpack.c.bf16 %v1714_v28, %v1714_v28 }
 0x1b4   : > { %v1570_v50 = vpop.f32.mrf.mxu2 }
 0x1b5   : > { %v1810_v8 = vunpack.c.l.b16 %v1746_v61  ;;  %v1647_v6 = vadd.f32 %v1570_v50, %v1310_v1 }
 0x1b7   : > { %v1841_v45 = vpack.c.b16 %v1810_v8, %v1809_v4  ;;  %v1683_v26 = vadd.f32 %v4988_v42, %v1647_v6  ;;  %v4239_v6 = vld [vmem:[%s5455_s3 + $0x20] sm:$0xff] }
 0x1b8   : > { %2888 = vmatpush.bf16.msrb.mxu0 %v4239_v6 }
 0x1b9   : > { %2065 = vrot.lane.b32.xlu2 %v1841_v45, %s4402_s16  ;;  %v1858_v53 = vshrl.u32 %v1841_v45, 16  ;;  %v1861_v62 = vshll.u32 %v1841_v45, 16  ;;  %v1715_v19 = vmax.f32 %v1683_v26, 0.0  ;;  %v1324_v26 = vpop.f32.mrf.mxu1 }
 0x1bb   : > { %v2001_v9 = vrot.slane %v1861_v62, 1  ;;  %v1860_v20 = vrot.slane %v1858_v53, 7  ;;  %v1747_v30 = vpack.c.bf16 %v1715_v19, %v1715_v19 }
 0x1bc   : > { %v1572_v49 = vpop.f32.mrf.mxu2 }
 0x1bd   : > { %v1648_v39 = vadd.f32 %v1572_v49, %v1312_v55  ;;  %v2002_v5 = vor.u32 %v2001_v9, %v1858_v53  ;;  %v5004_v57 = vor.u32 %v1861_v62, %v1860_v20  ;;  %v1811_v44 = vunpack.c.l.b16 %v1747_v30  ;;  %v1099_v55 = vpop.f32.mrf.mxu0 }
 0x1be   : > { %v1320_v9 = vadd.f32 %v1319_v15, %v1094_v27 }
 0x1bf   : > { %v1684_v38 = vadd.f32 %v4988_v42, %v1648_v39  ;;  %v2049_v0 = vsel %vm4511_vm2, %v2002_v5, 0 }
 0x1c0   : > { %2113 = vrot.lane.b32.xlu0 %v2049_v0, %s4403_s17 }
 0x1c1   : > { %v1716_v29 = vmax.f32 %v1684_v38, 0.0  ;;  %3804 = vmatmul.msk.bf16.gmra.mxu2 %vm1017_vm10, %v4212_v31 }
 0x1c3   : > { %v1748_v33 = vpack.c.bf16 %v1716_v29, %v1716_v29  ;;  %v1322_v29 = vadd.f32 %v1321_v11, %v1096_v3 }
 0x1c4   : > { %v1575_v36 = vpop.f32.mrf.mxu2 }
 0x1c5   : > { %v1812_v24 = vunpack.c.l.b16 %v1748_v33  ;;  %v1649_v18 = vadd.f32 %v1575_v36, %v1315_v35  ;;  %v1326_v35 = vpop.f32.mrf.mxu1 }
 0x1c7   : > { %v1842_v16 = vpack.c.b16 %v1812_v24, %v1811_v44  ;;  %v1685_v21 = vadd.f32 %v4988_v42, %v1649_v18  ;;  %v1101_v44 = vpop.f32.mrf.mxu0 }
 0x1c9   : > { %2067 = vrot.lane.b32.xlu1 %v1842_v16, %s4402_s16  ;;  %v1865_v22 = vshrl.u32 %v1842_v16, 16  ;;  %v1868_v28 = vshll.u32 %v1842_v16, 16  ;;  %v1717_v50 = vmax.f32 %v1685_v21, 0.0  ;;  %v4238_v16 = vld [vmem:[%s5455_s3 + $0x18] sm:$0xff] }
 0x1ca   : > { %2889 = vmatpush.bf16.msrb.mxu0 %v4238_v16  ;;  %v4237_v16 = vld [vmem:[%s5455_s3 + $0x10] sm:$0xff] }
 0x1cb   : > { %v2003_v46 = vrot.slane %v1868_v28, 1  ;;  %v1867_v1 = vrot.slane %v1865_v22, 7  ;;  %v1749_v53 = vpack.c.bf16 %v1717_v50, %v1717_v50 }
 0x1cc   : > { %v1577_v61 = vpop.f32.mrf.mxu2 }
 0x1cd   : > { %v1650_v4 = vadd.f32 %v1577_v61, %v1317_v43  ;;  %v2004_v8 = vor.u32 %v2003_v46, %v1865_v22  ;;  %v5022_v13 = vor.u32 %v1868_v28, %v1867_v1  ;;  %v1813_v19 = vunpack.c.l.b16 %v1749_v53  ;;  %v4214_v22 = vld [vmem:[#allocation2 + $0x70] sm:$0xff]  ;;  %v1329_v50 = vpop.f32.mrf.mxu1 }
 0x1ce   : > { %v1325_v46 = vadd.f32 %v1324_v26, %v1099_v55  ;;  %v1327_v26 = vadd.f32 %v1326_v35, %v1101_v44  ;;  %2890 = vmatpush.bf16.msrb.mxu0 %v4237_v16 }
 0x1cf   : > { %v1686_v45 = vadd.f32 %v4988_v42, %v1650_v4  ;;  %v2050_v56 = vsel %vm4511_vm2, %v2004_v8, 0 }
 0x1d0   : > { %2115 = vrot.lane.b32.xlu2 %v2050_v56, %s4403_s17 }
 0x1d1   : > { %v1718_v62 = vmax.f32 %v1686_v45, 0.0  ;;  %3805 = vmatmul.msk.bf16.gmra.mxu2 %vm1017_vm10, %v4213_v37  ;;  %v1104_v45 = vpop.f32.mrf.mxu0 }
 0x1d2   : > { %v1330_v44 = vadd.f32 %v1329_v50, %v1104_v45 }
 0x1d3   : > { %v1750_v20 = vpack.c.bf16 %v1718_v62, %v1718_v62 }
 0x1d4   : > { %v1580_v49 = vpop.f32.mrf.mxu2 }
 0x1d5   : > { %v1814_v39 = vunpack.c.l.b16 %v1750_v20  ;;  %v1651_v5 = vadd.f32 %v1580_v49, %v1320_v9 }
 0x1d7   : > { %v1843_v38 = vpack.c.b16 %v1814_v39, %v1813_v19  ;;  %v1687_v0 = vadd.f32 %v4988_v42, %v1651_v5  ;;  %v4259_v5 = vld [vmem:[%s5455_s3 + $0x40] sm:$0xff] }
 0x1d8   : > { %2637 = vmatpush.bf16.msrb.mxu3 %v4259_v5 }
 0x1d9   : > { %2069 = vrot.lane.b32.xlu0 %v1843_v38, %s4402_s16  ;;  %v1872_v31 = vshrl.u32 %v1843_v38, 16  ;;  %v1875_v30 = vshll.u32 %v1843_v38, 16  ;;  %v1719_v18 = vmax.f32 %v1687_v0, 0.0  ;;  %v1331_v0 = vpop.f32.mrf.mxu1  ;;  %v1106_v35 = vpop.f32.mrf.mxu0 }
 0x1db   : > { %v1874_v33 = vrot.slane %v1872_v31, 7  ;;  %v2005_v36 = vrot.slane %v1875_v30, 1  ;;  %v1751_v28 = vpack.c.bf16 %v1719_v18, %v1719_v18 }
 0x1dc   : > { %v1582_v24 = vpop.f32.mrf.mxu2 }
 0x1dd   : > { %v1652_v15 = vadd.f32 %v1582_v24, %v1322_v29  ;;  %v2006_v27 = vor.u32 %v2005_v36, %v1872_v31  ;;  %v5037_v21 = vor.u32 %v1875_v30, %v1874_v33  ;;  %v1815_v4 = vunpack.c.l.b16 %v1751_v28  ;;  %v4215_v29 = vld [vmem:[#allocation2 + $0x78] sm:$0xff] }
 0x1df   : > { %v1688_v11 = vadd.f32 %v4988_v42, %v1652_v15  ;;  %v2051_v3 = vsel %vm4511_vm2, %v2006_v27, 0 }
 0x1e0   : > { %2117 = vrot.lane.b32.xlu1 %v2051_v3, %s4403_s17 }
 0x1e1   : > { %v1720_v43 = vmax.f32 %v1688_v11, 0.0  ;;  %3806 = vmatmul.msk.bf16.gmra.mxu2 %vm1017_vm10, %v4214_v22  ;;  %v4281_v11 = vld [vmem:[%s5455_s3 + $0x70] sm:$0xff]  ;;  %v1334_v22 = vpop.f32.mrf.mxu1 }
 0x1e2   : > { %3189 = vmatpush.bf16.msrb.mxu1 %v4281_v11 }
 0x1e3   : > { %v1752_v1 = vpack.c.bf16 %v1720_v43, %v1720_v43 }
 0x1e4   : > { %v1585_v61 = vpop.f32.mrf.mxu2 }
 0x1e5   : > { %v1816_v8 = vunpack.c.l.b16 %v1752_v1  ;;  %v1653_v6 = vadd.f32 %v1585_v61, %v1325_v46  ;;  %v1109_v1 = vpop.f32.mrf.mxu0  ;;  %v1332_v61 = vadd.f32 %v1331_v0, %v1106_v35 }
 0x1e7   : > { %v1844_v56 = vpack.c.b16 %v1816_v8, %v1815_v4  ;;  %v1689_v37 = vadd.f32 %v4988_v42, %v1653_v6 }
 0x1e9   : > { %2071 = vrot.lane.b32.xlu2 %v1844_v56, %s4402_s16  ;;  %v1879_v53 = vshrl.u32 %v1844_v56, 16  ;;  %v1882_v62 = vshll.u32 %v1844_v56, 16  ;;  %v1721_v49 = vmax.f32 %v1689_v37, 0.0 }
 0x1eb   : > { %v1881_v55 = vrot.slane %v1879_v53, 7  ;;  %v2007_v9 = vrot.slane %v1882_v62, 1  ;;  %v1753_v33 = vpack.c.bf16 %v1721_v49, %v1721_v49  ;;  %v1336_v49 = vpop.f32.mrf.mxu1 }
 0x1ec   : > { %v1587_v20 = vpop.f32.mrf.mxu2 }
 0x1ed   : > { %v1654_v19 = vadd.f32 %v1587_v20, %v1327_v26  ;;  %v2008_v39 = vor.u32 %v2007_v9, %v1879_v53  ;;  %v5052_v38 = vor.u32 %v1882_v62, %v1881_v55  ;;  %v1817_v15 = vunpack.c.l.b16 %v1753_v33  ;;  %v4216_v62 = vld [vmem:[#allocation2 + $0x80] sm:$0xff]  ;;  %v5074_v9 = vpop.f32.mrf.mxu3 }
 0x1ee   : > { %v1335_v20 = vadd.f32 %v1334_v22, %v1109_v1 }
 0x1ef   : > { %v1690_v31 = vadd.f32 %v4988_v42, %v1654_v19  ;;  %v2052_v30 = vsel %vm4511_vm2, %v2008_v39, 0  ;;  %v1111_v39 = vpop.f32.mrf.mxu0 }
 0x1f0   : > { %2119 = vrot.lane.b32.xlu0 %v2052_v30, %s4403_s17 }
 0x1f1   : > { %v1722_v36 = vmax.f32 %v1690_v31, 0.0  ;;  %3807 = vmatmul.msk.bf16.gmra.mxu2 %vm1017_vm10, %v4215_v29  ;;  %v4258_v29 = vld [vmem:[%s5455_s3 + $0x38] sm:$0xff] }
 0x1f2   : > { %2638 = vmatpush.bf16.msrb.mxu3 %v4258_v29 }
 0x1f3   : > { %v1754_v24 = vpack.c.bf16 %v1722_v36, %v1722_v36 }
 0x1f4   : > { %v1590_v18 = vpop.f32.mrf.mxu2 }
 0x1f5   : > { %v1818_v27 = vunpack.c.l.b16 %v1754_v24  ;;  %v1655_v41 = vadd.f32 %v1590_v18, %v1330_v44  ;;  %v4236_v24 = vld [vmem:[%s5455_s3 + $0x8] sm:$0xff]  ;;  %v1337_v18 = vadd.f32 %v1336_v49, %v1111_v39 }
 0x1f6   : > { %2891 = vmatpush.bf16.msrb.mxu0 %v4236_v24 }
 0x1f7   : > { %v1845_v3 = vpack.c.b16 %v1818_v27, %v1817_v15  ;;  %v1691_v28 = vadd.f32 %v4988_v42, %v1655_v41  ;;  %v5090_v41 = vpop.f32.mrf.mxu3 }
 0x1f9   : > { %2073 = vrot.lane.b32.xlu1 %v1845_v3, %s4402_s16  ;;  %v1886_v43 = vshrl.u32 %v1845_v3, 16  ;;  %v1889_v46 = vshll.u32 %v1845_v3, 16  ;;  %v1723_v6 = vmax.f32 %v1691_v28, 0.0  ;;  %v4217_v28 = vld [vmem:[#allocation2 + $0x88] sm:$0xff] }
 0x1fb   : > { %v1888_v50 = vrot.slane %v1886_v43, 7  ;;  %v2009_v4 = vrot.slane %v1889_v46, 1  ;;  %v1755_v26 = vpack.c.bf16 %v1723_v6, %v1723_v6 }
 0x1fc   : > { %v1592_v8 = vpop.f32.mrf.mxu2 }
 0x1fd   : > { %v1656_v58 = vadd.f32 %v1592_v8, %v1332_v61  ;;  %v2010_v45 = vor.u32 %v2009_v4, %v1886_v43  ;;  %v5067_v56 = vor.u32 %v1889_v46, %v1888_v50  ;;  %v1819_v0 = vunpack.c.l.b16 %v1755_v26  ;;  %v4280_v43 = vld [vmem:[%s5455_s3 + $0x68] sm:$0xff]  ;;  %v4235_v46 = vld [vmem:[%s5455_s3] sm:$0xff]  ;;  %v1114_v61 = vpop.f32.mrf.mxu0  ;;  %v1339_v50 = vpop.f32.mrf.mxu1 }
 0x1fe   : > { %3190 = vmatpush.bf16.msrb.mxu1 %v4280_v43  ;;  %2892 = vmatpush.bf16.msrb.mxu0 %v4235_v46 }
 0x1ff   : > { %v1692_v37 = vadd.f32 %v4988_v42, %v1656_v58  ;;  %v2053_v53 = vsel %vm4511_vm2, %v2010_v45, 0  ;;  %v4219_v58 = vld [vmem:[#allocation3] sm:$0xff]  ;;  %v1340_v45 = vadd.f32 %v1339_v50, %v1114_v61 }
 0x200   : > { %2121 = vrot.lane.b32.xlu2 %v2053_v53, %s4403_s17 }
 0x201   : > { %v1724_v55 = vmax.f32 %v1692_v37, 0.0  ;;  %3808 = vmatmul.msk.bf16.gmra.mxu2 %vm1017_vm10, %v4216_v62  ;;  %4014 = vmatmul.msk.bf16.vlgmr.msrb.gmra.mxu0 %vm2583_vm12, %v4219_v58 }
 0x203   : > { %v1756_v19 = vpack.c.bf16 %v1724_v55, %v1724_v55 }
 0x204   : > { %v1595_v5 = vpop.f32.mrf.mxu2 }
 0x205   : > { %v1820_v31 = vunpack.c.l.b16 %v1756_v19  ;;  %v1657_v30 = vadd.f32 %v1595_v5, %v1335_v20  ;;  %v1349_v20 = vpop.f32.mrf.mxu3  ;;  %v1116_v19 = vpop.f32.mrf.mxu0 }
 0x206   : > { %v1341_v39 = vpop.f32.mrf.mxu1 }
 0x207   : > { %v1846_v35 = vpack.c.b16 %v1820_v31, %v1819_v0  ;;  %v1693_v33 = vadd.f32 %v4988_v42, %v1657_v30  ;;  %v1342_v30 = vadd.f32 %v1341_v39, %v1116_v19 }
 0x209   : > { %2075 = vrot.lane.b32.xlu0 %v1846_v35, %s4402_s16  ;;  %v1893_v36 = vshrl.u32 %v1846_v35, 16  ;;  %v1896_v44 = vshll.u32 %v1846_v35, 16  ;;  %v1725_v11 = vmax.f32 %v1693_v33, 0.0 }
 0x20b   : > { %v1895_v15 = vrot.slane %v1893_v36, 7  ;;  %v2011_v27 = vrot.slane %v1896_v44, 1  ;;  %v1757_v8 = vpack.c.bf16 %v1725_v11, %v1725_v11 }
 0x20c   : > { %v1597_v16 = vpop.f32.mrf.mxu2 }
 0x20d   : > { %v1658_v3 = vadd.f32 %v1597_v16, %v1337_v18  ;;  %v2012_v22 = vor.u32 %v2011_v27, %v1893_v36  ;;  %v5100_v1 = vor.u32 %v1896_v44, %v1895_v15  ;;  %v1821_v62 = vunpack.c.l.b16 %v1757_v8  ;;  %v4257_v18 = vld [vmem:[%s5455_s3 + $0x30] sm:$0xff]  ;;  %v1351_v11 = vpop.f32.mrf.mxu3 }
 0x20e   : > { %2639 = vmatpush.bf16.msrb.mxu3 %v4257_v18 }
 0x20f   : > { %v1694_v4 = vadd.f32 %v4988_v42, %v1658_v3  ;;  %v2054_v25 = vsel %vm4511_vm2, %v2012_v22, 0 }
 0x210   : > { %2123 = vrot.lane.b32.xlu1 %v2054_v25, %s4403_s17  ;;  %v4279_v25 = vld [vmem:[%s5455_s3 + $0x60] sm:$0xff] }
 0x211   : > { %v1726_v6 = vmax.f32 %v1694_v4, 0.0  ;;  %3809 = vmatmul.msk.bf16.gmra.mxu2 %vm1017_vm10, %v4217_v28  ;;  %v1345_v28 = vadd.f32 %v5074_v9, %v4931_v48  ;;  %3191 = vmatpush.bf16.msrb.mxu1 %v4279_v25  ;;  %v1347_v48 = vadd.f32 %v5090_v41, %v4938_v14  ;;  %v1985_v14 = vsel %vm4708_vm6, 0, %v5004_v57 }
 0x213   : > { %v1758_v37 = vpack.c.bf16 %v1726_v6, %v1726_v6  ;;  %v2066_v39 = vpop.permute.xlu2 %2065 }
 0x214   : > { %v1600_v53 = vpop.f32.mrf.mxu2 }
 0x215   : > { %v1822_v26 = vunpack.c.l.b16 %v1758_v37  ;;  %v1659_v55 = vadd.f32 %v1600_v53, %v1340_v45  ;;  %v5126_v37 = vpop.f32.mrf.mxu3 }
 0x217   : > { %v1847_v49 = vpack.c.b16 %v1822_v26, %v1821_v62  ;;  %v1695_v5 = vadd.f32 %v4988_v42, %v1659_v55 }
 0x219   : > { %2077 = vrot.lane.b32.xlu2 %v1847_v49, %s4402_s16  ;;  %v1900_v0 = vshrl.u32 %v1847_v49, 16  ;;  %v1903_v31 = vshll.u32 %v1847_v49, 16  ;;  %v1727_v36 = vmax.f32 %v1695_v5, 0.0 }
 0x21b   : > { %v1902_v29 = vrot.slane %v1900_v0, 7  ;;  %v2013_v35 = vrot.slane %v1903_v31, 1  ;;  %v1759_v3 = vpack.c.bf16 %v1727_v36, %v1727_v36 }
 0x21c   : > { %v1602_v33 = vpop.f32.mrf.mxu2 }
 0x21d   : > { %v1660_v44 = vadd.f32 %v1602_v33, %v1342_v30  ;;  %v2014_v24 = vor.u32 %v2013_v35, %v1900_v0  ;;  %v5113_v15 = vor.u32 %v1903_v31, %v1902_v29  ;;  %v1823_v61 = vunpack.c.l.b16 %v1759_v3 }
 0x21e   : > { %v2148_v30 = vsel %vm2145_vm13, %v1985_v14, %v2066_v39  ;;  %v1350_v35 = vadd.f32 %v1349_v20, %v4943_v54 }
 0x21f   : > { %v1696_v27 = vadd.f32 %v4988_v42, %v1660_v44  ;;  %v2055_v16 = vsel %vm4511_vm2, %v2014_v24, 0  ;;  %v1356_v44 = vpop.f32.mrf.mxu3 }
 0x220   : > { %2125 = vrot.lane.b32.xlu0 %v2055_v16, %s4403_s17 }
 0x221   : > { %v1728_v22 = vmax.f32 %v1696_v27, 0.0 }
 0x223   : > { %v1760_v43 = vpack.c.bf16 %v1728_v22, %v1728_v22 }
 0x224   : > { %v1605_v46 = vpop.f32.mrf.mxu2 }
 0x225   : > { %v1824_v50 = vunpack.c.l.b16 %v1760_v43  ;;  %v1661_v4 = vadd.f32 %v1605_v46, %v1345_v28 }
 0x227   : > { %v1848_v8 = vpack.c.b16 %v1824_v50, %v1823_v61  ;;  %v1697_v6 = vadd.f32 %v4988_v42, %v1661_v4  ;;  %v1352_v61 = vadd.f32 %v1351_v11, %v4948_v60  ;;  %v1986_v4 = vsel %vm4708_vm6, 0, %v5022_v13 }
 0x229   : > { %2079 = vrot.lane.b32.xlu1 %v1848_v8, %s4402_s16  ;;  %v1907_v58 = vshrl.u32 %v1848_v8, 16  ;;  %v1910_v45 = vshll.u32 %v1848_v8, 16  ;;  %v1729_v26 = vmax.f32 %v1697_v6, 0.0 }
 0x22a   : > { %v2116_v6 = vpop.permute.xlu2 %2115 }
 0x22b   : > { %v1909_v9 = vrot.slane %v1907_v58, 7  ;;  %v2015_v53 = vrot.slane %v1910_v45, 1  ;;  %v1761_v41 = vpack.c.bf16 %v1729_v26, %v1729_v26  ;;  %v1359_v26 = vpop.f32.mrf.mxu3 }
 0x22c   : > { %v1607_v62 = vpop.f32.mrf.mxu2 }
 0x22d   : > { %v1662_v55 = vadd.f32 %v1607_v62, %v1347_v48  ;;  %v2016_v49 = vor.u32 %v2015_v53, %v1907_v58  ;;  %v5130_v19 = vor.u32 %v1910_v45, %v1909_v9  ;;  %v1825_v16 = vunpack.c.l.b16 %v1761_v41 }
 0x22f   : > { %v1698_v5 = vadd.f32 %v4988_v42, %v1662_v55  ;;  %v2056_v0 = vsel %vm4511_vm2, %v2016_v49, 0 }
 0x230   : > { %2127 = vrot.lane.b32.xlu2 %v2056_v0, %s4403_s17 }
 0x231   : > { %v1730_v31 = vmax.f32 %v1698_v5, 0.0 }
 0x232   : > { %v2114_v29 = vpop.permute.xlu0 %2113 }
 0x233   : > { %v1762_v33 = vpack.c.bf16 %v1730_v31, %v1730_v31  ;;  %v2196_v36 = vsel %vm2194_vm14, %v2148_v30, %v2114_v29  ;;  %v1355_v30 = vadd.f32 %v5126_v37, %v4951_v23 }
 0x234   : > { %v2249_v24 = vunpack.c.l.b16 %v2196_v36  ;;  %v2250_v18 = vunpack.c.h.b16 %v2196_v36  ;;  %v1610_v27 = vpop.f32.mrf.mxu2 }
 0x235   : > { %v1826_v3 = vunpack.c.l.b16 %v1762_v33  ;;  %v1663_v22 = vadd.f32 %v1610_v27, %v1350_v35  ;;  %v1361_v27 = vpop.f32.mrf.mxu3 }
 0x236   : > { %v2281_v28 = vpack.c.b16 %v2249_v24, %v2249_v24  ;;  %v2282_v43 = vpack.c.b16 %v2250_v18, %v2250_v18 }
 0x237   : > { %v1849_v57 = vpack.c.b16 %v1826_v3, %v1825_v16  ;;  %v1699_v46 = vadd.f32 %v4988_v42, %v1663_v22 }
 0x238   : > { %2346 = vst.msk [vmem:[#allocation3 + $0x8] sm:$0xf] %vm2227_vm11, %v2281_v28 }
 0x239   : > { %2347 = vst.msk [vmem:[#allocation3 + $0xc] sm:$0xf] %vm2227_vm11, %v2282_v43  ;;  %2081 = vrot.lane.b32.xlu0 %v1849_v57, %s4402_s16  ;;  %v1914_v54 = vshrl.u32 %v1849_v57, 16  ;;  %v1917_v20 = vshll.u32 %v1849_v57, 16  ;;  %v1731_v48 = vmax.f32 %v1699_v46, 0.0  ;;  %v1357_v43 = vadd.f32 %v1356_v44, %v4956_v63 }
 0x23b   : > { %v2068_v50 = vpop.permute.xlu1 %2067  ;;  %v1916_v25 = vrot.slane %v1914_v54, 7  ;;  %v2017_v8 = vrot.slane %v1917_v20, 1  ;;  %v1763_v41 = vpack.c.bf16 %v1731_v48, %v1731_v48 }
 0x23c   : > { %v2151_v58 = vsel %vm2145_vm13, %v1986_v4, %v2068_v50  ;;  %v1612_v45 = vpop.f32.mrf.mxu2 }
 0x23d   : > { %v2198_v9 = vsel %vm2194_vm14, %v2151_v58, %v2116_v6  ;;  %v1664_v53 = vadd.f32 %v1612_v45, %v1352_v61  ;;  %v2018_v62 = vor.u32 %v2017_v8, %v1914_v54  ;;  %v5152_v60 = vor.u32 %v1917_v20, %v1916_v25  ;;  %v1364_v45 = vpop.f32.mrf.mxu3 }
 0x23e   : > { %v2251_v55 = vunpack.c.l.b16 %v2198_v9  ;;  %v2252_v49 = vunpack.c.h.b16 %v2198_v9  ;;  %v1827_v33 = vunpack.c.l.b16 %v1763_v41  ;;  %v1987_v6 = vsel %vm4708_vm6, 0, %v5037_v21 }
 0x23f   : > { %v1700_v11 = vadd.f32 %v4988_v42, %v1664_v53  ;;  %v2057_v13 = vsel %vm4511_vm2, %v2018_v62, 0  ;;  %v1360_v53 = vadd.f32 %v1359_v26, %v4959_v59 }
 0x240   : > { %v2283_v39 = vpack.c.b16 %v2251_v55, %v2251_v55  ;;  %v2284_v5 = vpack.c.b16 %v2252_v49, %v2252_v49  ;;  %2129 = vrot.lane.b32.xlu1 %v2057_v13, %s4403_s17  ;;  %v4241_v0 = vld [vmem:[#allocation3 + $0x8] sm:$0xff] }
 0x241   : > { %v4220_v14 = vld [vmem:[#allocation3 + $0x8] sm:$0xff]  ;;  %v1732_v31 = vmax.f32 %v1700_v11, 0.0  ;;  %3910 = vmatmul.msk.bf16.vlgmr.msrb.gmra.mxu3 %vm2583_vm12, %v4241_v0 }
 0x242   : > { %2348 = vst.msk [vmem:[#allocation3 + $0x10] sm:$0xf] %vm2227_vm11, %v2283_v39  ;;  %4015 = vmatmul.msk.bf16.gmra.mxu0 %vm2583_vm12, %v4220_v14 }
 0x243   : > { %2349 = vst.msk [vmem:[#allocation3 + $0x14] sm:$0xf] %vm2227_vm11, %v2284_v5  ;;  %v1764_v29 = vpack.c.bf16 %v1732_v31, %v1732_v31 }
 0x244   : > { %v1615_v35 = vpop.f32.mrf.mxu2 }
 0x245   : > { %v1828_v36 = vunpack.c.l.b16 %v1764_v29  ;;  %v1665_v24 = vadd.f32 %v1615_v35, %v1355_v30  ;;  %v1362_v30 = vadd.f32 %v1361_v27, %v4962_v12  ;;  %v1988_v27 = vsel %vm4708_vm6, 0, %v5052_v38 }
 0x247   : > { %v1850_v18 = vpack.c.b16 %v1828_v36, %v1827_v33  ;;  %v1701_v16 = vadd.f32 %v4988_v42, %v1665_v24  ;;  %v1366_v33 = vpop.f32.mrf.mxu3 }
 0x249   : > { %2083 = vrot.lane.b32.xlu2 %v1850_v18, %s4402_s16  ;;  %v1921_v3 = vshrl.u32 %v1850_v18, 16  ;;  %v1924_v22 = vshll.u32 %v1850_v18, 16  ;;  %v1733_v46 = vmax.f32 %v1701_v16, 0.0 }
 0x24a   : > { %v4263_v28 = vld [vmem:[#allocation3 + $0x10] sm:$0xff] }
 0x24b   : > { %v1923_v57 = vrot.slane %v1921_v3, 7  ;;  %v2019_v23 = vrot.slane %v1924_v22, 1  ;;  %4130 = vmatmul.msk.bf16.vlgmr.msrb.gmra.mxu1 %vm2583_vm12, %v4263_v28  ;;  %v2070_v50 = vpop.permute.xlu0 %2069  ;;  %v4242_v8 = vld [vmem:[#allocation3 + $0x10] sm:$0xff]  ;;  %v1765_v44 = vpack.c.bf16 %v1733_v46, %v1733_v46 }
 0x24c   : > { %v1617_v37 = vpop.f32.mrf.mxu2  ;;  %v4221_v63 = vld [vmem:[#allocation3 + $0x10] sm:$0xff]  ;;  %v2154_v48 = vsel %vm2145_vm13, %v1987_v6, %v2070_v50  ;;  %v1365_v50 = vadd.f32 %v1364_v45, %v4965_v40 }
 0x24d   : > { %v1666_v54 = vadd.f32 %v1617_v37, %v1357_v43  ;;  %v2020_v20 = vor.u32 %v2019_v23, %v1921_v3  ;;  %v5168_v61 = vor.u32 %v1924_v22, %v1923_v57  ;;  %v1829_v39 = vunpack.c.l.b16 %v1765_v44  ;;  %v2072_v22 = vpop.permute.xlu2 %2071 }
 0x24f   : > { %v1702_v4 = vadd.f32 %v4988_v42, %v1666_v54  ;;  %v2058_v25 = vsel %vm4511_vm2, %v2020_v20, 0  ;;  %v2157_v54 = vsel %vm2145_vm13, %v1988_v27, %v2072_v22 }
 0x250   : > { %2131 = vrot.lane.b32.xlu0 %v2058_v25, %s4403_s17 }
 0x251   : > { %v1734_v58 = vmax.f32 %v1702_v4, 0.0  ;;  %3911 = vmatmul.msk.bf16.gmra.mxu3 %vm2583_vm12, %v4242_v8 }
 0x252   : > { %v2118_v9 = vpop.permute.xlu1 %2117  ;;  %4016 = vmatmul.msk.bf16.gmra.mxu0 %vm2583_vm12, %v4221_v63 }
 0x253   : > { %v1766_v62 = vpack.c.bf16 %v1734_v58, %v1734_v58  ;;  %v2200_v55 = vsel %vm2194_vm14, %v2154_v48, %v2118_v9  ;;  %v1369_v48 = vpop.f32.mrf.mxu3 }
 0x254   : > { %v2253_v49 = vunpack.c.l.b16 %v2200_v55  ;;  %v2254_v11 = vunpack.c.h.b16 %v2200_v55  ;;  %v1620_v13 = vpop.f32.mrf.mxu2 }
 0x255   : > { %v1830_v5 = vunpack.c.l.b16 %v1766_v62  ;;  %v1667_v21 = vadd.f32 %v1620_v13, %v1360_v53 }
 0x256   : > { %v2285_v0 = vpack.c.b16 %v2253_v49, %v2253_v49  ;;  %v2286_v14 = vpack.c.b16 %v2254_v11, %v2254_v11  ;;  %v1367_v49 = vadd.f32 %v1366_v33, %v4967_v47  ;;  %v1989_v11 = vsel %vm4708_vm6, 0, %v5067_v56 }
 0x257   : > { %v1851_v41 = vpack.c.b16 %v1830_v5, %v1829_v39  ;;  %v1703_v31 = vadd.f32 %v4988_v42, %v1667_v21 }
 0x258   : > { %2350 = vst.msk [vmem:[#allocation3 + $0x18] sm:$0xf] %vm2227_vm11, %v2285_v0 }
 0x259   : > { %2351 = vst.msk [vmem:[#allocation3 + $0x1c] sm:$0xf] %vm2227_vm11, %v2286_v14  ;;  %2085 = vrot.lane.b32.xlu1 %v1851_v41, %s4402_s16  ;;  %v1928_v59 = vshrl.u32 %v1851_v41, 16  ;;  %v1931_v26 = vshll.u32 %v1851_v41, 16  ;;  %v1735_v24 = vmax.f32 %v1703_v31, 0.0 }
 0x25a   : > { %v2122_v21 = vpop.permute.xlu2 %2121 }
 0x25b   : > { %v1930_v29 = vrot.slane %v1928_v59, 7  ;;  %v2021_v35 = vrot.slane %v1931_v26, 1  ;;  %v1767_v37 = vpack.c.bf16 %v1735_v24, %v1735_v24  ;;  %v1371_v33 = vpop.f32.mrf.mxu3 }
 0x25c   : > { %v1622_v36 = vpop.f32.mrf.mxu2 }
 0x25d   : > { %v1668_v18 = vadd.f32 %v1622_v36, %v1362_v30  ;;  %v2022_v16 = vor.u32 %v2021_v35, %v1928_v59  ;;  %v5187_v3 = vor.u32 %v1931_v26, %v1930_v29  ;;  %v1831_v38 = vunpack.c.l.b16 %v1767_v37 }
 0x25f   : > { %v1704_v28 = vadd.f32 %v4988_v42, %v1668_v18  ;;  %v2059_v43 = vsel %vm4511_vm2, %v2022_v16, 0 }
 0x260   : > { %2133 = vrot.lane.b32.xlu2 %v2059_v43, %s4403_s17  ;;  %v4243_v57 = vld [vmem:[#allocation3 + $0x18] sm:$0xff] }
 0x261   : > { %v4222_v23 = vld [vmem:[#allocation3 + $0x18] sm:$0xff]  ;;  %v1736_v46 = vmax.f32 %v1704_v28, 0.0  ;;  %3912 = vmatmul.msk.bf16.gmra.mxu3 %vm2583_vm12, %v4243_v57  ;;  %v1370_v57 = vadd.f32 %v1369_v48, %v4970_v51 }
 0x262   : > { %v4264_v12 = vld [vmem:[#allocation3 + $0x18] sm:$0xff]  ;;  %v2120_v20 = vpop.permute.xlu0 %2119  ;;  %4017 = vmatmul.msk.bf16.gmra.mxu0 %vm2583_vm12, %v4222_v23 }
 0x263   : > { %v1768_v4 = vpack.c.bf16 %v1736_v46, %v1736_v46  ;;  %v2202_v25 = vsel %vm2194_vm14, %v2157_v54, %v2120_v20  ;;  %4131 = vmatmul.msk.bf16.gmra.mxu1 %vm2583_vm12, %v4264_v12 }
 0x264   : > { %v2255_v8 = vunpack.c.l.b16 %v2202_v25  ;;  %v2256_v63 = vunpack.c.h.b16 %v2202_v25  ;;  %v1625_v44 = vpop.f32.mrf.mxu2  ;;  %v1374_v25 = vpop.f32.mrf.mxu3 }
 0x265   : > { %v1832_v6 = vunpack.c.l.b16 %v1768_v4  ;;  %v1669_v58 = vadd.f32 %v1625_v44, %v1365_v50 }
 0x266   : > { %v2287_v9 = vpack.c.b16 %v2255_v8, %v2255_v8  ;;  %v2288_v53 = vpack.c.b16 %v2256_v63, %v2256_v63  ;;  %v1372_v8 = vadd.f32 %v1371_v33, %v4972_v52  ;;  %v1990_v52 = vsel %vm4708_vm6, 0, %v5100_v1 }
 0x267   : > { %v1852_v62 = vpack.c.b16 %v1832_v6, %v1831_v38  ;;  %v1705_v40 = vadd.f32 %v4988_v42, %v1669_v58 }
 0x268   : > { %2352 = vst.msk [vmem:[#allocation3 + $0x20] sm:$0xf] %vm2227_vm11, %v2287_v9 }
 0x269   : > { %2353 = vst.msk [vmem:[#allocation3 + $0x24] sm:$0xf] %vm2227_vm11, %v2288_v53  ;;  %2087 = vrot.lane.b32.xlu0 %v1852_v62, %s4402_s16  ;;  %v1935_v45 = vshrl.u32 %v1852_v62, 16  ;;  %v1938_v55 = vshll.u32 %v1852_v62, 16  ;;  %v1737_v41 = vmax.f32 %v1705_v40, 0.0 }
 0x26b   : > { %v2074_v13 = vpop.permute.xlu1 %2073  ;;  %v1937_v39 = vrot.slane %v1935_v45, 7  ;;  %v2023_v5 = vrot.slane %v1938_v55, 1  ;;  %v1769_v28 = vpack.c.bf16 %v1737_v41, %v1737_v41 }
 0x26c   : > { %v2160_v0 = vsel %vm2145_vm13, %v1989_v11, %v2074_v13  ;;  %v1627_v14 = vpop.f32.mrf.mxu2 }
 0x26d   : > { %v2204_v31 = vsel %vm2194_vm14, %v2160_v0, %v2122_v21  ;;  %v1670_v59 = vadd.f32 %v1627_v14, %v1367_v49  ;;  %v2024_v26 = vor.u32 %v2023_v5, %v1935_v45  ;;  %v5212_v35 = vor.u32 %v1938_v55, %v1937_v39  ;;  %v1376_v0 = vpop.f32.mrf.mxu3 }
 0x26e   : > { %v2257_v30 = vunpack.c.l.b16 %v2204_v31  ;;  %v2258_v29 = vunpack.c.h.b16 %v2204_v31  ;;  %v1833_v27 = vunpack.c.l.b16 %v1769_v28 }
 0x26f   : > { %v1706_v47 = vadd.f32 %v4988_v42, %v1670_v59  ;;  %v2060_v56 = vsel %vm4511_vm2, %v2024_v26, 0 }
 0x270   : > { %v2289_v36 = vpack.c.b16 %v2257_v30, %v2257_v30  ;;  %v2290_v24 = vpack.c.b16 %v2258_v29, %v2258_v29  ;;  %2135 = vrot.lane.b32.xlu1 %v2060_v56, %s4403_s17  ;;  %v4244_v18 = vld [vmem:[#allocation3 + $0x20] sm:$0xff] }
 0x271   : > { %v4223_v16 = vld [vmem:[#allocation3 + $0x20] sm:$0xff]  ;;  %v1738_v43 = vmax.f32 %v1706_v47, 0.0  ;;  %3913 = vmatmul.msk.bf16.gmra.mxu3 %vm2583_vm12, %v4244_v18 }
 0x272   : > { %v4265_v22 = vld [vmem:[#allocation3 + $0x20] sm:$0xff]  ;;  %2354 = vst.msk [vmem:[#allocation3 + $0x28] sm:$0xf] %vm2227_vm11, %v2289_v36  ;;  %4018 = vmatmul.msk.bf16.gmra.mxu0 %vm2583_vm12, %v4223_v16 }
 0x273   : > { %2355 = vst.msk [vmem:[#allocation3 + $0x2c] sm:$0xf] %vm2227_vm11, %v2290_v24  ;;  %v1770_v23 = vpack.c.bf16 %v1738_v43, %v1738_v43  ;;  %4132 = vmatmul.msk.bf16.gmra.mxu1 %vm2583_vm12, %v4265_v22  ;;  %v1377_v24 = vadd.f32 %v1376_v0, %v4977_v7 }
 0x274   : > { %v1630_v12 = vpop.f32.mrf.mxu2 }
 0x275   : > { %v1834_v37 = vunpack.c.l.b16 %v1770_v23  ;;  %v1671_v46 = vadd.f32 %v1630_v12, %v1370_v57  ;;  %v1379_v12 = vpop.f32.mrf.mxu3 }
 0x277   : > { %v1853_v54 = vpack.c.b16 %v1834_v37, %v1833_v27  ;;  %v1707_v20 = vadd.f32 %v4988_v42, %v1671_v46  ;;  %v2078_v27 = vpop.permute.xlu2 %2077 }
 0x279   : > { %2089 = vrot.lane.b32.xlu2 %v1853_v54, %s4402_s16  ;;  %v1942_v50 = vshrl.u32 %v1853_v54, 16  ;;  %v1945_v4 = vshll.u32 %v1853_v54, 16  ;;  %v1739_v38 = vmax.f32 %v1707_v20, 0.0 }
 0x27a   : > { %v4245_v40 = vld [vmem:[#allocation3 + $0x28] sm:$0xff] }
 0x27b   : > { %v1944_v51 = vrot.slane %v1942_v50, 7  ;;  %v2025_v63 = vrot.slane %v1945_v4, 1  ;;  %v2076_v9 = vpop.permute.xlu0 %2075  ;;  %v4224_v45 = vld [vmem:[#allocation3 + $0x28] sm:$0xff]  ;;  %v1771_v55 = vpack.c.bf16 %v1739_v38, %v1739_v38 }
 0x27c   : > { %v1632_v44 = vpop.f32.mrf.mxu2  ;;  %v4266_v11 = vld [vmem:[#allocation3 + $0x28] sm:$0xff]  ;;  %v2163_v13 = vsel %vm2145_vm13, %v1990_v52, %v2076_v9 }
 0x27d   : > { %v1672_v6 = vadd.f32 %v1632_v44, %v1372_v8  ;;  %v2026_v58 = vor.u32 %v2025_v63, %v1942_v50  ;;  %v5227_v48 = vor.u32 %v1945_v4, %v1944_v51  ;;  %v1835_v31 = vunpack.c.l.b16 %v1771_v55  ;;  %v1381_v52 = vpop.f32.mrf.mxu3 }
 0x27e   : > { %v1991_v50 = vsel %vm4708_vm6, 0, %v5113_v15  ;;  %v1380_v63 = vadd.f32 %v1379_v12, %v4980_v34 }
 0x27f   : > { %v1708_v53 = vadd.f32 %v4988_v42, %v1672_v6  ;;  %v2061_v62 = vsel %vm4511_vm2, %v2026_v58, 0  ;;  %v1375_v42 = vadd.f32 %v1374_v25, %v4975_v2  ;;  %v5247_v2 = vld [vmem:[%s5454_s2] ss:$0 sm:$0xff]  ;;  %v2166_v8 = vsel %vm2145_vm13, %v1991_v50, %v2078_v27 }
 0x280   : > { %2137 = vrot.lane.b32.xlu0 %v2061_v62, %s4403_s17 }
 0x281   : > { %v1740_v49 = vmax.f32 %v1708_v53, 0.0  ;;  %3914 = vmatmul.msk.bf16.gmra.mxu3 %vm2583_vm12, %v4245_v40 }
 0x282   : > { %v2124_v39 = vpop.permute.xlu1 %2123  ;;  %4019 = vmatmul.msk.bf16.gmra.mxu0 %vm2583_vm12, %v4224_v45 }
 0x283   : > { %v1772_v5 = vpack.c.bf16 %v1740_v49, %v1740_v49  ;;  %v2206_v21 = vsel %vm2194_vm14, %v2163_v13, %v2124_v39  ;;  %4133 = vmatmul.msk.bf16.gmra.mxu1 %vm2583_vm12, %v4266_v11  ;;  %v1382_v13 = vadd.f32 %v1381_v52, %v4982_v32  ;;  %v1992_v39 = vsel %vm4708_vm6, 0, %v5130_v19 }
 0x284   : > { %v2259_v14 = vunpack.c.l.b16 %v2206_v21  ;;  %v2260_v41 = vunpack.c.h.b16 %v2206_v21  ;;  %v1635_v1 = vpop.f32.mrf.mxu2  ;;  %v1994_v52 = vsel %vm4708_vm6, 0, %v5168_v61 }
 0x285   : > { %v1836_v59 = vunpack.c.l.b16 %v1772_v5  ;;  %v1673_v26 = vadd.f32 %v1635_v1, %v1375_v42 }
 0x286   : > { %v2291_v30 = vpack.c.b16 %v2259_v14, %v2259_v14  ;;  %v2292_v29 = vpack.c.b16 %v2260_v41, %v2260_v41 }
 0x287   : > { %v1854_v47 = vpack.c.b16 %v1836_v59, %v1835_v31  ;;  %v1709_v56 = vadd.f32 %v5247_v2, %v1673_v26 }
 0x288   : > { %2356 = vst.msk [vmem:[#allocation3 + $0x30] sm:$0xf] %vm2227_vm11, %v2291_v30 }
 0x289   : > { %2357 = vst.msk [vmem:[#allocation3 + $0x34] sm:$0xf] %vm2227_vm11, %v2292_v29  ;;  %2091 = vrot.lane.b32.xlu1 %v1854_v47, %s4402_s16  ;;  %v1949_v33 = vshrl.u32 %v1854_v47, 16  ;;  %v1952_v36 = vshll.u32 %v1854_v47, 16  ;;  %v1741_v28 = vmax.f32 %v1709_v56, 0.0 }
 0x28a   : > { %v2128_v0 = vpop.permute.xlu2 %2127 }
 0x28b   : > { %v1951_v18 = vrot.slane %v1949_v33, 7  ;;  %v2027_v16 = vrot.slane %v1952_v36, 1  ;;  %v1773_v4 = vpack.c.bf16 %v1741_v28, %v1741_v28 }
 0x28c   : > { %v1637_v22 = vpop.f32.mrf.mxu2 }
 0x28d   : > { %v1674_v43 = vadd.f32 %v1637_v22, %v1377_v24  ;;  %v2028_v57 = vor.u32 %v2027_v16, %v1949_v33  ;;  %v5252_v23 = vor.u32 %v1952_v36, %v1951_v18  ;;  %v1837_v15 = vunpack.c.l.b16 %v1773_v4 }
 0x28f   : > { %v1710_v37 = vadd.f32 %v5247_v2, %v1674_v43  ;;  %v2062_v46 = vsel %vm4511_vm2, %v2028_v57, 0 }
 0x290   : > { %2139 = vrot.lane.b32.xlu2 %v2062_v46, %s4403_s17  ;;  %v4246_v54 = vld [vmem:[#allocation3 + $0x30] sm:$0xff] }
 0x291   : > { %v4225_v20 = vld [vmem:[#allocation3 + $0x30] sm:$0xff]  ;;  %v1742_v25 = vmax.f32 %v1710_v37, 0.0  ;;  %3915 = vmatmul.msk.bf16.gmra.mxu3 %vm2583_vm12, %v4246_v54  ;;  %v2894_v37 = vpop.f32.mrf.mxu0 }
 0x292   : > { %v4267_v7 = vld [vmem:[#allocation3 + $0x30] sm:$0xff]  ;;  %v2126_v51 = vpop.permute.xlu0 %2125  ;;  %4020 = vmatmul.msk.bf16.gmra.mxu0 %vm2583_vm12, %v4225_v20 }
 0x293   : > { %v1774_v44 = vpack.c.bf16 %v1742_v25, %v1742_v25  ;;  %v2208_v38 = vsel %vm2194_vm14, %v2166_v8, %v2126_v51  ;;  %4134 = vmatmul.msk.bf16.gmra.mxu1 %vm2583_vm12, %v4267_v7  ;;  %v1993_v51 = vsel %vm4708_vm6, 0, %v5152_v60 }
 0x294   : > { %v2261_v6 = vunpack.c.l.b16 %v2208_v38  ;;  %v2262_v58 = vunpack.c.h.b16 %v2208_v38  ;;  %v1640_v9 = vpop.f32.mrf.mxu2 }
 0x295   : > { %v1838_v53 = vunpack.c.l.b16 %v1774_v44  ;;  %v1675_v62 = vadd.f32 %v1640_v9, %v1380_v63 }
 0x296   : > { %v2293_v40 = vpack.c.b16 %v2261_v6, %v2261_v6  ;;  %v2294_v45 = vpack.c.b16 %v2262_v58, %v2262_v58 }
 0x297   : > { %v1855_v55 = vpack.c.b16 %v1838_v53, %v1837_v15  ;;  %v1711_v34 = vadd.f32 %v5247_v2, %v1675_v62 }
 0x298   : > { %2358 = vst.msk [vmem:[#allocation3 + $0x38] sm:$0xf] %vm2227_vm11, %v2293_v40 }
 0x299   : > { %2359 = vst.msk [vmem:[#allocation3 + $0x3c] sm:$0xf] %vm2227_vm11, %v2294_v45  ;;  %2093 = vrot.lane.b32.xlu0 %v1855_v55, %s4402_s16  ;;  %v1956_v49 = vshrl.u32 %v1855_v55, 16  ;;  %v1959_v11 = vshll.u32 %v1855_v55, 16  ;;  %v1743_v1 = vmax.f32 %v1711_v34, 0.0  ;;  %v2896_v9 = vpop.f32.mrf.mxu0 }
 0x29b   : > { %v2080_v42 = vpop.permute.xlu1 %2079  ;;  %v1958_v5 = vrot.slane %v1956_v49, 7  ;;  %v2029_v21 = vrot.slane %v1959_v11, 1  ;;  %v1775_v16 = vpack.c.bf16 %v1743_v1, %v1743_v1 }
 0x29c   : > { %v2169_v14 = vsel %vm2145_vm13, %v1992_v39, %v2080_v42  ;;  %v1642_v41 = vpop.f32.mrf.mxu2 }
 0x29d   : > { %v2210_v31 = vsel %vm2194_vm14, %v2169_v14, %v2128_v0  ;;  %v1676_v59 = vadd.f32 %v1642_v41, %v1382_v13  ;;  %v2030_v26 = vor.u32 %v2029_v21, %v1956_v49  ;;  %v5277_v47 = vor.u32 %v1959_v11, %v1958_v5 }
 0x29e   : > { %v2263_v30 = vunpack.c.l.b16 %v2210_v31  ;;  %v2264_v29 = vunpack.c.h.b16 %v2210_v31  ;;  %v1839_v28 = vunpack.c.l.b16 %v1775_v16  ;;  %v1995_v14 = vsel %vm4708_vm6, 0, %v5187_v3 }
 0x29f   : > { %v1712_v32 = vadd.f32 %v5247_v2, %v1676_v59  ;;  %v2063_v19 = vsel %vm4511_vm2, %v2030_v26, 0 }
 0x2a0   : > { %v2295_v56 = vpack.c.b16 %v2263_v30, %v2263_v30  ;;  %v2296_v33 = vpack.c.b16 %v2264_v29, %v2264_v29  ;;  %2141 = vrot.lane.b32.xlu1 %v2063_v19, %s4403_s17  ;;  %v4247_v36 = vld [vmem:[#allocation3 + $0x38] sm:$0xff] }
 0x2a1   : > { %v4226_v24 = vld [vmem:[#allocation3 + $0x38] sm:$0xff]  ;;  %v1744_v22 = vmax.f32 %v1712_v32, 0.0  ;;  %3916 = vmatmul.msk.bf16.gmra.mxu3 %vm2583_vm12, %v4247_v36 }
 0x2a2   : > { %v4268_v18 = vld [vmem:[#allocation3 + $0x38] sm:$0xff]  ;;  %2360 = vst.msk [vmem:[#allocation3 + $0x40] sm:$0xf] %vm2227_vm11, %v2295_v56  ;;  %4021 = vmatmul.msk.bf16.gmra.mxu0 %vm2583_vm12, %v4226_v24 }
 0x2a3   : > { %2361 = vst.msk [vmem:[#allocation3 + $0x44] sm:$0xf] %vm2227_vm11, %v2296_v33  ;;  %v1776_v2 = vpack.c.bf16 %v1744_v22, %v1744_v22  ;;  %4135 = vmatmul.msk.bf16.gmra.mxu1 %vm2583_vm12, %v4268_v18  ;;  %v2084_v60 = vpop.permute.xlu2 %2083  ;;  %v5322_v33 = vld [vmem:[%s5456_s4] ss:$0 sm:$0xff] }
 0x2a4   : > { %v2175_v34 = vsel %vm2145_vm13, %v1994_v52, %v2084_v60 }
 0x2a5   : > { %v1840_v43 = vunpack.c.l.b16 %v1776_v2 }
 0x2a7   : > { %v1856_v57 = vpack.c.b16 %v1840_v43, %v1839_v28 }
 0x2a9   : > { %2095 = vrot.lane.b32.xlu2 %v1856_v57, %s4402_s16  ;;  %v1963_v12 = vshrl.u32 %v1856_v57, 16  ;;  %v1966_v27 = vshll.u32 %v1856_v57, 16 }
 0x2aa   : > { %v4248_v25 = vld [vmem:[#allocation3 + $0x40] sm:$0xff] }
 0x2ab   : > { %v1965_v46 = vrot.slane %v1963_v12, 7  ;;  %v2031_v54 = vrot.slane %v1966_v27, 1  ;;  %v2082_v50 = vpop.permute.xlu0 %2081  ;;  %v4227_v8 = vld [vmem:[#allocation3 + $0x40] sm:$0xff] }
 0x2ac   : > { %v4269_v63 = vld [vmem:[#allocation3 + $0x40] sm:$0xff]  ;;  %v2172_v44 = vsel %vm2145_vm13, %v1993_v51, %v2082_v50 }
 0x2ad   : > { %v2032_v20 = vor.u32 %v2031_v54, %v1963_v12  ;;  %v5289_v7 = vor.u32 %v1966_v27, %v1965_v46 }
 0x2af   : > { %v2064_v4 = vsel %vm4511_vm2, %v2032_v20, 0 }
 0x2b0   : > { %2143 = vrot.lane.b32.xlu0 %v2064_v4, %s4403_s17 }
 0x2b1   : > { %3917 = vmatmul.msk.bf16.gmra.mxu3 %vm2583_vm12, %v4248_v25 }
 0x2b2   : > { %v2130_v38 = vpop.permute.xlu1 %2129  ;;  %4022 = vmatmul.msk.bf16.gmra.mxu0 %vm2583_vm12, %v4227_v8  ;;  %v1996_v8 = vsel %vm4708_vm6, 0, %v5212_v35 }
 0x2b3   : > { %v2212_v6 = vsel %vm2194_vm14, %v2172_v44, %v2130_v38  ;;  %4136 = vmatmul.msk.bf16.gmra.mxu1 %vm2583_vm12, %v4269_v63 }
 0x2b4   : > { %v2265_v10 = vunpack.c.l.b16 %v2212_v6  ;;  %v2266_v58 = vunpack.c.h.b16 %v2212_v6 }
 0x2b6   : > { %v2297_v15 = vpack.c.b16 %v2265_v10, %v2265_v10  ;;  %v2298_v53 = vpack.c.b16 %v2266_v58, %v2266_v58 }
 0x2b8   : > { %2362 = vst.msk [vmem:[#allocation3 + $0x48] sm:$0xf] %vm2227_vm11, %v2297_v15 }
 0x2b9   : > { %2363 = vst.msk [vmem:[#allocation3 + $0x4c] sm:$0xf] %vm2227_vm11, %v2298_v53 }
 0x2ba   : > { %v2134_v1 = vpop.permute.xlu2 %2133 }
 0x2bf   : > { %v2899_v62 = vpop.f32.mrf.mxu0 }
 0x2c0   : > { %v4249_v40 = vld [vmem:[#allocation3 + $0x48] sm:$0xff] }
 0x2c1   : > { %v4228_v45 = vld [vmem:[#allocation3 + $0x48] sm:$0xff]  ;;  %3918 = vmatmul.msk.bf16.gmra.mxu3 %vm2583_vm12, %v4249_v40 }
 0x2c2   : > { %v4270_v55 = vld [vmem:[#allocation3 + $0x48] sm:$0xff]  ;;  %v2132_v49 = vpop.permute.xlu0 %2131  ;;  %4023 = vmatmul.msk.bf16.gmra.mxu0 %vm2583_vm12, %v4228_v45 }
 0x2c3   : > { %v2214_v11 = vsel %vm2194_vm14, %v2175_v34, %v2132_v49  ;;  %4137 = vmatmul.msk.bf16.gmra.mxu1 %vm2583_vm12, %v4270_v55 }
 0x2c4   : > { %v2267_v13 = vunpack.c.l.b16 %v2214_v11  ;;  %v2268_v39 = vunpack.c.h.b16 %v2214_v11  ;;  %v2641_v42 = vpop.f32.mrf.mxu3 }
 0x2c5   : > { %v2895_v59 = vadd.f32 %v2894_v37, %v2641_v42 }
 0x2c6   : > { %v2299_v5 = vpack.c.b16 %v2267_v13, %v2267_v13  ;;  %v2300_v21 = vpack.c.b16 %v2268_v39, %v2268_v39 }
 0x2c7   : > { %v2901_v0 = vpop.f32.mrf.mxu0 }
 0x2c8   : > { %2364 = vst.msk [vmem:[#allocation3 + $0x50] sm:$0xf] %vm2227_vm11, %v2299_v5  ;;  %v3193_v61 = vpop.f32.mrf.mxu1 }
 0x2c9   : > { %2365 = vst.msk [vmem:[#allocation3 + $0x54] sm:$0xf] %vm2227_vm11, %v2300_v21  ;;  %v3273_v19 = vadd.f32 %v3193_v61, %v2895_v59  ;;  %v1997_v21 = vsel %vm4708_vm6, 0, %v5227_v48 }
 0x2cb   : > { %v2086_v41 = vpop.permute.xlu1 %2085  ;;  %v3309_v22 = vadd.f32 %v5322_v33, %v3273_v19 }
 0x2cc   : > { %v2178_v31 = vsel %vm2145_vm13, %v1995_v14, %v2086_v41  ;;  %v2643_v30 = vpop.f32.mrf.mxu3 }
 0x2cd   : > { %v2216_v26 = vsel %vm2194_vm14, %v2178_v31, %v2134_v1  ;;  %v2897_v28 = vadd.f32 %v2896_v9, %v2643_v30 }
 0x2ce   : > { %v2269_v29 = vunpack.c.l.b16 %v2216_v26  ;;  %v2270_v32 = vunpack.c.h.b16 %v2216_v26 }
 0x2cf   : > { %v2904_v56 = vpop.f32.mrf.mxu0 }
 0x2d0   : > { %v2301_v36 = vpack.c.b16 %v2269_v29, %v2269_v29  ;;  %v2302_v24 = vpack.c.b16 %v2270_v32, %v2270_v32  ;;  %v4250_v3 = vld [vmem:[#allocation3 + $0x50] sm:$0xff]  ;;  %v3195_v2 = vpop.f32.mrf.mxu1 }
 0x2d1   : > { %v4229_v18 = vld [vmem:[#allocation3 + $0x50] sm:$0xff]  ;;  %3919 = vmatmul.msk.bf16.gmra.mxu3 %vm2583_vm12, %v4250_v3  ;;  %v3274_v57 = vadd.f32 %v3195_v2, %v2897_v28 }
 0x2d2   : > { %v4271_v16 = vld [vmem:[#allocation3 + $0x50] sm:$0xff]  ;;  %2366 = vst.msk [vmem:[#allocation3 + $0x58] sm:$0xf] %vm2227_vm11, %v2301_v36  ;;  %4024 = vmatmul.msk.bf16.gmra.mxu0 %vm2583_vm12, %v4229_v18 }
 0x2d3   : > { %2367 = vst.msk [vmem:[#allocation3 + $0x5c] sm:$0xf] %vm2227_vm11, %v2302_v24  ;;  %4138 = vmatmul.msk.bf16.gmra.mxu1 %vm2583_vm12, %v4271_v16  ;;  %v3310_v27 = vadd.f32 %v5322_v33, %v3274_v57  ;;  %v2090_v34 = vpop.permute.xlu2 %2089  ;;  %v1998_v24 = vsel %vm4708_vm6, 0, %v5252_v23 }
 0x2d4   : > { %v2646_v43 = vpop.f32.mrf.mxu3  ;;  %v2184_v61 = vsel %vm2145_vm13, %v1997_v21, %v2090_v34 }
 0x2d5   : > { %3341 = vxpose.xlu1.b32.start [1/16] (narrow) %v3309_v22, 8  ;;  %v2900_v46 = vadd.f32 %v2899_v62, %v2646_v43 }
 0x2d7   : > { %v2906_v12 = vpop.f32.mrf.mxu0 }
 0x2da   : > { %v4251_v4 = vld [vmem:[#allocation3 + $0x58] sm:$0xff] }
 0x2db   : > { %v2088_v54 = vpop.permute.xlu0 %2087  ;;  %v4230_v25 = vld [vmem:[#allocation3 + $0x58] sm:$0xff] }
 0x2dc   : > { %v2648_v37 = vpop.f32.mrf.mxu3  ;;  %v4272_v63 = vld [vmem:[#allocation3 + $0x58] sm:$0xff]  ;;  %v2181_v44 = vsel %vm2145_vm13, %v1996_v8, %v2088_v54 }
 0x2dd   : > { %3342 = vxpose.xlu1.b32.cont [2/16] (narrow) %v3310_v27, 8  ;;  %v2902_v60 = vadd.f32 %v2901_v0, %v2648_v37 }
 0x2df   : > { %v5331_v20 = vpop.f32.mrf.mxu0 }
 0x2e0   : > { %v3198_v50 = vpop.f32.mrf.mxu1 }
 0x2e1   : > { %v3275_v51 = vadd.f32 %v3198_v50, %v2900_v46  ;;  %3920 = vmatmul.msk.bf16.gmra.mxu3 %vm2583_vm12, %v4251_v4 }
 0x2e2   : > { %v2136_v38 = vpop.permute.xlu1 %2135  ;;  %4025 = vmatmul.msk.bf16.gmra.mxu0 %vm2583_vm12, %v4230_v25 }
 0x2e3   : > { %v3311_v6 = vadd.f32 %v5322_v33, %v3275_v51  ;;  %v2218_v10 = vsel %vm2194_vm14, %v2181_v44, %v2136_v38  ;;  %4139 = vmatmul.msk.bf16.gmra.mxu1 %vm2583_vm12, %v4272_v63 }
 0x2e4   : > { %v2271_v58 = vunpack.c.l.b16 %v2218_v10  ;;  %v2272_v9 = vunpack.c.h.b16 %v2218_v10  ;;  %v2651_v15 = vpop.f32.mrf.mxu3 }
 0x2e5   : > { %3343 = vxpose.xlu1.b32.cont [3/16] (narrow) %v3311_v6, 8  ;;  %v2905_v49 = vadd.f32 %v2904_v56, %v2651_v15 }
 0x2e6   : > { %v2303_v35 = vpack.c.b16 %v2271_v58, %v2271_v58  ;;  %v2304_v53 = vpack.c.b16 %v2272_v9, %v2272_v9 }
 0x2e7   : > { %v5342_v62 = vpop.f32.mrf.mxu0 }
 0x2e8   : > { %2368 = vst.msk [vmem:[#allocation3 + $0x60] sm:$0xf] %vm2227_vm11, %v2303_v35  ;;  %v3200_v40 = vpop.f32.mrf.mxu1 }
 0x2e9   : > { %2369 = vst.msk [vmem:[#allocation3 + $0x64] sm:$0xf] %vm2227_vm11, %v2304_v53  ;;  %v3276_v45 = vadd.f32 %v3200_v40, %v2902_v60  ;;  %v1999_v60 = vsel %vm4708_vm6, 0, %v5277_v47 }
 0x2ea   : > { %v2140_v18 = vpop.permute.xlu2 %2139 }
 0x2eb   : > { %v3312_v55 = vadd.f32 %v5322_v33, %v3276_v45 }
 0x2ec   : > { %v2653_v52 = vpop.f32.mrf.mxu3 }
 0x2ed   : > { %3344 = vxpose.xlu1.b32.cont [4/16] (narrow) %v3312_v55, 8  ;;  %v2907_v29 = vadd.f32 %v2906_v12, %v2653_v52 }
 0x2ef   : > { %v2914_v11 = vpop.f32.mrf.mxu0 }
 0x2f0   : > { %v3203_v13 = vpop.f32.mrf.mxu1  ;;  %v4252_v39 = vld [vmem:[#allocation3 + $0x60] sm:$0xff] }
 0x2f1   : > { %v4231_v42 = vld [vmem:[#allocation3 + $0x60] sm:$0xff]  ;;  %v3277_v0 = vadd.f32 %v3203_v13, %v2905_v49  ;;  %3921 = vmatmul.msk.bf16.gmra.mxu3 %vm2583_vm12, %v4252_v39 }
 0x2f2   : > { %v4273_v5 = vld [vmem:[#allocation3 + $0x60] sm:$0xff]  ;;  %v2138_v14 = vpop.permute.xlu0 %2137  ;;  %4026 = vmatmul.msk.bf16.gmra.mxu0 %vm2583_vm12, %v4231_v42 }
 0x2f3   : > { %v3313_v41 = vadd.f32 %v5322_v33, %v3277_v0  ;;  %v2220_v1 = vsel %vm2194_vm14, %v2184_v61, %v2138_v14  ;;  %4140 = vmatmul.msk.bf16.gmra.mxu1 %vm2583_vm12, %v4273_v5 }
 0x2f4   : > { %v2273_v31 = vunpack.c.l.b16 %v2220_v1  ;;  %v2274_v59 = vunpack.c.h.b16 %v2220_v1  ;;  %v2656_v26 = vpop.f32.mrf.mxu3 }
 0x2f5   : > { %3345 = vxpose.xlu1.b32.cont [5/16] (narrow) %v3313_v41, 8  ;;  %v2910_v57 = vadd.f32 %v5331_v20, %v2656_v26 }
 0x2f6   : > { %v2305_v30 = vpack.c.b16 %v2273_v31, %v2273_v31  ;;  %v2306_v48 = vpack.c.b16 %v2274_v59, %v2274_v59 }
 0x2f7   : > { %v2916_v32 = vpop.f32.mrf.mxu0 }
 0x2f8   : > { %2370 = vst.msk [vmem:[#allocation3 + $0x68] sm:$0xf] %vm2227_vm11, %v2305_v30  ;;  %v3205_v19 = vpop.f32.mrf.mxu1 }
 0x2f9   : > { %2371 = vst.msk [vmem:[#allocation3 + $0x6c] sm:$0xf] %vm2227_vm11, %v2306_v48  ;;  %v3278_v56 = vadd.f32 %v3205_v19, %v2907_v29  ;;  %v2000_v29 = vsel %vm4708_vm6, 0, %v5289_v7 }
 0x2fb   : > { %v3314_v36 = vadd.f32 %v5322_v33, %v3278_v56  ;;  %v2092_v3 = vpop.permute.xlu1 %2091 }
 0x2fc   : > { %v2187_v16 = vsel %vm2145_vm13, %v1998_v24, %v2092_v3  ;;  %v2658_v2 = vpop.f32.mrf.mxu3 }
 0x2fd   : > { %v2222_v22 = vsel %vm2194_vm14, %v2187_v16, %v2140_v18  ;;  %3346 = vxpose.xlu1.b32.cont [6/16] (narrow) %v3314_v36, 8  ;;  %v2912_v8 = vadd.f32 %v5342_v62, %v2658_v2 }
 0x2fe   : > { %v2275_v28 = vunpack.c.l.b16 %v2222_v22  ;;  %v2276_v43 = vunpack.c.h.b16 %v2222_v22 }
 0x2ff   : > { %v2919_v12 = vpop.f32.mrf.mxu0 }
 0x300   : > { %v2307_v27 = vpack.c.b16 %v2275_v28, %v2275_v28  ;;  %v2308_v37 = vpack.c.b16 %v2276_v43, %v2276_v43  ;;  %v3208_v46 = vpop.f32.mrf.mxu1  ;;  %v4253_v54 = vld [vmem:[#allocation3 + $0x68] sm:$0xff] }
 0x301   : > { %v4232_v50 = vld [vmem:[#allocation3 + $0x68] sm:$0xff]  ;;  %v3279_v23 = vadd.f32 %v3208_v46, %v2910_v57  ;;  %3922 = vmatmul.msk.bf16.gmra.mxu3 %vm2583_vm12, %v4253_v54 }
 0x302   : > { %v4274_v4 = vld [vmem:[#allocation3 + $0x68] sm:$0xff]  ;;  %2372 = vst.msk [vmem:[#allocation3 + $0x70] sm:$0xf] %vm2227_vm11, %v2307_v27  ;;  %4027 = vmatmul.msk.bf16.gmra.mxu0 %vm2583_vm12, %v4232_v50 }
 0x303   : > { %2373 = vst.msk [vmem:[#allocation3 + $0x74] sm:$0xf] %vm2227_vm11, %v2308_v37  ;;  %v3315_v25 = vadd.f32 %v5322_v33, %v3279_v23  ;;  %4141 = vmatmul.msk.bf16.gmra.mxu1 %vm2583_vm12, %v4274_v4  ;;  %v2096_v41 = vpop.permute.xlu2 %2095 }
 0x304   : > { %v2661_v20 = vpop.f32.mrf.mxu3  ;;  %v2193_v19 = vsel %vm2145_vm13, %v2000_v29, %v2096_v41 }
 0x305   : > { %3347 = vxpose.xlu1.b32.cont [7/16] (narrow) %v3315_v25, 8  ;;  %v2915_v10 = vadd.f32 %v2914_v11, %v2661_v20 }
 0x307   : > { %v2921_v51 = vpop.f32.mrf.mxu0 }
 0x308   : > { %v3210_v63 = vpop.f32.mrf.mxu1 }
 0x309   : > { %v3280_v44 = vadd.f32 %v3210_v63, %v2912_v8 }
 0x30a   : > { %v4254_v35 = vld [vmem:[#allocation3 + $0x70] sm:$0xff] }
 0x30b   : > { %v3316_v38 = vadd.f32 %v5322_v33, %v3280_v44  ;;  %v2094_v58 = vpop.permute.xlu0 %2093  ;;  %v4233_v53 = vld [vmem:[#allocation3 + $0x70] sm:$0xff] }
 0x30c   : > { %v2663_v6 = vpop.f32.mrf.mxu3  ;;  %v4275_v45 = vld [vmem:[#allocation3 + $0x70] sm:$0xff]  ;;  %v2190_v62 = vsel %vm2145_vm13, %v1999_v60, %v2094_v58 }
 0x30d   : > { %3348 = vxpose.xlu1.b32.cont [8/16] (narrow) %v3316_v38, 8  ;;  %v2917_v42 = vadd.f32 %v2916_v32, %v2663_v6 }
 0x30f   : > { %v2924_v9 = vpop.f32.mrf.mxu0 }
 0x310   : > { %v3213_v15 = vpop.f32.mrf.mxu1 }
 0x311   : > { %v3281_v40 = vadd.f32 %v3213_v15, %v2915_v10  ;;  %3923 = vmatmul.msk.bf16.gmra.mxu3 %vm2583_vm12, %v4254_v35  ;;  %v4278_v10 = vld [vmem:[#allocation3 + $0x88] sm:$0xff] }
 0x312   : > { %v2142_v55 = vpop.permute.xlu1 %2141  ;;  %4028 = vmatmul.msk.bf16.gmra.mxu0 %vm2583_vm12, %v4233_v53 }
 0x313   : > { %v3317_v52 = vadd.f32 %v5322_v33, %v3281_v40  ;;  %v2224_v34 = vsel %vm2194_vm14, %v2190_v62, %v2142_v55  ;;  %4142 = vmatmul.msk.bf16.gmra.mxu1 %vm2583_vm12, %v4275_v45 }
 0x314   : > { %v2277_v49 = vunpack.c.l.b16 %v2224_v34  ;;  %v2278_v11 = vunpack.c.h.b16 %v2224_v34  ;;  %v2666_v13 = vpop.f32.mrf.mxu3 }
 0x315   : > { %3349 = vxpose.xlu1.b32.cont [9/16] (narrow) %v3317_v52, 8  ;;  %v2920_v1 = vadd.f32 %v2919_v12, %v2666_v13 }
 0x316   : > { %v2309_v47 = vpack.c.b16 %v2277_v49, %v2277_v49  ;;  %v2310_v39 = vpack.c.b16 %v2278_v11, %v2278_v11 }
 0x317   : > { %v2926_v5 = vpop.f32.mrf.mxu0 }
 0x318   : > { %2374 = vst.msk [vmem:[#allocation3 + $0x78] sm:$0xf] %vm2227_vm11, %v2309_v47  ;;  %v3215_v21 = vpop.f32.mrf.mxu1 }
 0x319   : > { %2375 = vst.msk [vmem:[#allocation3 + $0x7c] sm:$0xf] %vm2227_vm11, %v2310_v39  ;;  %v3282_v0 = vadd.f32 %v3215_v21, %v2917_v42 }
 0x31b   : > { %v3318_v61 = vadd.f32 %v5322_v33, %v3282_v0 }
 0x31c   : > { %v2668_v14 = vpop.f32.mrf.mxu3 }
 0x31d   : > { %3350 = vxpose.xlu1.b32.cont [10/16] (narrow) %v3318_v61, 8  ;;  %v2922_v22 = vadd.f32 %v2921_v51, %v2668_v14 }
 0x31f   : > { %v2929_v31 = vpop.f32.mrf.mxu0 }
 0x320   : > { %v3218_v59 = vpop.f32.mrf.mxu1  ;;  %v4255_v26 = vld [vmem:[#allocation3 + $0x78] sm:$0xff] }
 0x321   : > { %v4234_v30 = vld [vmem:[#allocation3 + $0x78] sm:$0xff]  ;;  %v3283_v32 = vadd.f32 %v3218_v59, %v2920_v1  ;;  %3924 = vmatmul.msk.bf16.gmra.mxu3 %vm2583_vm12, %v4255_v26 }
 0x322   : > { %v4276_v48 = vld [vmem:[#allocation3 + $0x78] sm:$0xff]  ;;  %v2144_v56 = vpop.permute.xlu0 %2143  ;;  %4029 = vmatmul.msk.bf16.gmra.mxu0 %vm2583_vm12, %v4234_v30 }
 0x323   : > { %v3319_v36 = vadd.f32 %v5322_v33, %v3283_v32  ;;  %v2226_v24 = vsel %vm2194_vm14, %v2193_v19, %v2144_v56  ;;  %4143 = vmatmul.msk.bf16.gmra.mxu1 %vm2583_vm12, %v4276_v48 }
 0x324   : > { %v2279_v3 = vunpack.c.l.b16 %v2226_v24  ;;  %v2280_v18 = vunpack.c.h.b16 %v2226_v24  ;;  %v2671_v16 = vpop.f32.mrf.mxu3 }
 0x325   : > { %3351 = vxpose.xlu1.b32.cont [11/16] (narrow) %v3319_v36, 8  ;;  %v2925_v27 = vadd.f32 %v2924_v9, %v2671_v16 }
 0x326   : > { %v2311_v17 = vpack.c.b16 %v2279_v3, %v2279_v3  ;;  %v2312_v7 = vpack.c.b16 %v2280_v18, %v2280_v18 }
 0x327   : > { %v2931_v2 = vpop.f32.mrf.mxu0 }
 0x328   : > { %2376 = vst.msk [vmem:[#allocation3 + $0x80] sm:$0xf] %vm2227_vm11, %v2311_v17  ;;  %v3220_v28 = vpop.f32.mrf.mxu1 }
 0x329   : > { %2377 = vst.msk [vmem:[#allocation3 + $0x84] sm:$0xf] %vm2227_vm11, %v2312_v7  ;;  %v3284_v43 = vadd.f32 %v3220_v28, %v2922_v22 }
 0x32b   : > { %v3320_v57 = vadd.f32 %v5322_v33, %v3284_v43 }
 0x32c   : > { %v2673_v12 = vpop.f32.mrf.mxu3 }
 0x32d   : > { %3352 = vxpose.xlu1.b32.cont [12/16] (narrow) %v3320_v57, 8  ;;  %v2927_v20 = vadd.f32 %v2926_v5, %v2673_v12 }
 0x32f   : > { %v2934_v37 = vpop.f32.mrf.mxu0 }
 0x330   : > { %v3223_v46 = vpop.f32.mrf.mxu1  ;;  %v4256_v54 = vld [vmem:[#allocation3 + $0x80] sm:$0xff] }
 0x331   : > { %v4277_v50 = vld [vmem:[#allocation3 + $0x80] sm:$0xff]  ;;  %v3285_v4 = vadd.f32 %v3223_v46, %v2925_v27  ;;  %3925 = vmatmul.msk.bf16.gmra.mxu3 %vm2583_vm12, %v4256_v54 }
 0x333   : > { %v3321_v23 = vadd.f32 %v5322_v33, %v3285_v4  ;;  %4144 = vmatmul.msk.bf16.gmra.mxu1 %vm2583_vm12, %v4277_v50 }
 0x334   : > { %v2676_v25 = vpop.f32.mrf.mxu3 }
 0x335   : > { %3353 = vxpose.xlu1.b32.cont [13/16] (narrow) %v3321_v23, 8  ;;  %v2930_v6 = vadd.f32 %v2929_v31, %v2676_v25 }
 0x337   : > { %v2936_v63 = vpop.f32.mrf.mxu0 }
 0x338   : > { %v3225_v8 = vpop.f32.mrf.mxu1 }
 0x339   : > { %v3286_v51 = vadd.f32 %v3225_v8, %v2927_v20 }
 0x33b   : > { %v3322_v44 = vadd.f32 %v5322_v33, %v3286_v51 }
 0x33c   : > { %v2678_v38 = vpop.f32.mrf.mxu3 }
 0x33d   : > { %3354 = vxpose.xlu1.b32.cont [14/16] (narrow) %v3322_v44, 8  ;;  %v2932_v60 = vadd.f32 %v2931_v2, %v2678_v38 }
 0x33f   : > { %v2939_v35 = vpop.f32.mrf.mxu0 }
 0x340   : > { %v3228_v58 = vpop.f32.mrf.mxu1 }
 0x341   : > { %v3287_v9 = vadd.f32 %v3228_v58, %v2930_v6 }
 0x343   : > { %v3323_v15 = vadd.f32 %v5322_v33, %v3287_v9  ;;  %4145 = vmatmul.msk.bf16.gmra.mxu1 %vm2583_vm12, %v4278_v10 }
 0x344   : > { %v2681_v53 = vpop.f32.mrf.mxu3 }
 0x345   : > { %3355 = vxpose.xlu1.b32.cont [15/16] (narrow) %v3323_v15, 8  ;;  %v2935_v34 = vadd.f32 %v2934_v37, %v2681_v53 }
 0x347   : > { %v2941_v52 = vpop.f32.mrf.mxu0 }
 0x348   : > { %v3230_v40 = vpop.f32.mrf.mxu1 }
 0x349   : > { %v3288_v45 = vadd.f32 %v3230_v40, %v2932_v60 }
 0x34b   : > { %v3324_v62 = vadd.f32 %v5322_v33, %v3288_v45 }
 0x34c   : > { %v2683_v55 = vpop.f32.mrf.mxu3 }
 0x34d   : > { %3356 = vxpose.xlu1.b32.end [16/16] (narrow) %v3324_v62, 8  ;;  %v2937_v39 = vadd.f32 %v2936_v63, %v2683_v55 }
 0x34f   : > { %v2944_v42 = vpop.f32.mrf.mxu0 }
 0x350   : > { %v3233_v49 = vpop.f32.mrf.mxu1 }
 0x351   : > { %v3289_v11 = vadd.f32 %v3233_v49, %v2935_v34 }
 0x353   : > { %v3325_v13 = vadd.f32 %v5322_v33, %v3289_v11 }
 0x354   : > { %v2686_v47 = vpop.f32.mrf.mxu3 }
 0x355   : > { %3373 = vxpose.xlu2.b32.start [1/16] (narrow) %v3325_v13, 8  ;;  %v2940_v14 = vadd.f32 %v2939_v35, %v2686_v47 }
 0x357   : > { %v2946_v31 = vpop.f32.mrf.mxu0 }
 0x358   : > { %v3235_v5 = vpop.f32.mrf.mxu1 }
 0x359   : > { %v3290_v21 = vadd.f32 %v3235_v5, %v2937_v39 }
 0x35b   : > { %v3326_v0 = vadd.f32 %v5322_v33, %v3290_v21 }
 0x35c   : > { %v2688_v61 = vpop.f32.mrf.mxu3 }
 0x35d   : > { %3374 = vxpose.xlu2.b32.cont [2/16] (narrow) %v3326_v0, 8  ;;  %v2942_v30 = vadd.f32 %v2941_v52, %v2688_v61 }
 0x35f   : > { %v2949_v19 = vpop.f32.mrf.mxu0 }
 0x360   : > { %v3238_v41 = vpop.f32.mrf.mxu1 }
 0x361   : > { %v3291_v1 = vadd.f32 %v3238_v41, %v2940_v14 }
 0x363   : > { %v3327_v59 = vadd.f32 %v5322_v33, %v3291_v1 }
 0x364   : > { %v2691_v26 = vpop.f32.mrf.mxu3 }
 0x365   : > { %3375 = vxpose.xlu2.b32.cont [3/16] (narrow) %v3327_v59, 8  ;;  %v2945_v36 = vadd.f32 %v2944_v42, %v2691_v26 }
 0x367   : > { %v2951_v17 = vpop.f32.mrf.mxu0 }
 0x368   : > { %v3240_v48 = vpop.f32.mrf.mxu1 }
 0x369   : > { %v3292_v29 = vadd.f32 %v3240_v48, %v2942_v30 }
 0x36b   : > { %v3328_v32 = vadd.f32 %v5322_v33, %v3292_v29 }
 0x36c   : > { %v2693_v56 = vpop.f32.mrf.mxu3 }
 0x36d   : > { %3376 = vxpose.xlu2.b32.cont [4/16] (narrow) %v3328_v32, 8  ;;  %v2947_v7 = vadd.f32 %v2946_v31, %v2693_v56 }
 0x36f   : > { %v2954_v12 = vpop.f32.mrf.mxu0 }
 0x370   : > { %v3243_v24 = vpop.f32.mrf.mxu1 }
 0x371   : > { %v3293_v3 = vadd.f32 %v3243_v24, %v2945_v36 }
 0x373   : > { %v3329_v18 = vadd.f32 %v5322_v33, %v3293_v3 }
 0x374   : > { %v2696_v16 = vpop.f32.mrf.mxu3 }
 0x375   : > { %3377 = vxpose.xlu2.b32.cont [5/16] (narrow) %v3329_v18, 8  ;;  %v2950_v57 = vadd.f32 %v2949_v19, %v2696_v16 }
 0x377   : > { %v2956_v25 = vpop.f32.mrf.mxu0 }
 0x378   : > { %v3245_v22 = vpop.f32.mrf.mxu1 }
 0x379   : > { %v3294_v2 = vadd.f32 %v3245_v22, %v2947_v7  ;;  %v3357_v16 = vpop.trf.xlu1 }
 0x37a   : > { %3405 = vst [vmem:[%s217_s8] sm:$0xff] %v3357_v16 }
 0x37b   : > { %v3330_v28 = vadd.f32 %v5322_v33, %v3294_v2 }
 0x37c   : > { %v2698_v43 = vpop.f32.mrf.mxu3 }
 0x37d   : > { %3378 = vxpose.xlu2.b32.cont [6/16] (narrow) %v3330_v28, 8  ;;  %v2952_v50 = vadd.f32 %v2951_v17, %v2698_v43 }
 0x37f   : > { %v2959_v6 = vpop.f32.mrf.mxu0 }
 0x380   : > { %v3248_v27 = vpop.f32.mrf.mxu1 }
 0x381   : > { %v3295_v37 = vadd.f32 %v3248_v27, %v2950_v57 }
 0x383   : > { %v3331_v46 = vadd.f32 %v5322_v33, %v3295_v37 }
 0x384   : > { %v2701_v54 = vpop.f32.mrf.mxu3 }
 0x385   : > { %3379 = vxpose.xlu2.b32.cont [7/16] (narrow) %v3331_v46, 8  ;;  %v2955_v51 = vadd.f32 %v2954_v12, %v2701_v54 }
 0x387   : > { %v2961_v60 = vpop.f32.mrf.mxu0 }
 0x388   : > { %v3250_v4 = vpop.f32.mrf.mxu1 }
 0x389   : > { %v3296_v23 = vadd.f32 %v3250_v4, %v2952_v50 }
 0x38b   : > { %v3332_v20 = vadd.f32 %v5322_v33, %v3296_v23 }
 0x38c   : > { %v2703_v8 = vpop.f32.mrf.mxu3 }
 0x38d   : > { %3380 = vxpose.xlu2.b32.cont [8/16] (narrow) %v3332_v20, 8  ;;  %v2957_v58 = vadd.f32 %v2956_v25, %v2703_v8 }
 0x38f   : > { %v2964_v49 = vpop.f32.mrf.mxu0 }
 0x390   : > { %v3253_v63 = vpop.f32.mrf.mxu1 }
 0x391   : > { %v3297_v44 = vadd.f32 %v3253_v63, %v2955_v51 }
 0x393   : > { %v3333_v38 = vadd.f32 %v5322_v33, %v3297_v44 }
 0x394   : > { %v2706_v10 = vpop.f32.mrf.mxu3 }
 0x395   : > { %3381 = vxpose.xlu2.b32.cont [9/16] (narrow) %v3333_v38, 8  ;;  %v2960_v40 = vadd.f32 %v2959_v6, %v2706_v10 }
 0x397   : > { %v2966_v0 = vpop.f32.mrf.mxu0 }
 0x398   : > { %v3255_v9 = vpop.f32.mrf.mxu1 }
 0x399   : > { %v3298_v15 = vadd.f32 %v3255_v9, %v2957_v58 }
 0x39b   : > { %v3334_v35 = vadd.f32 %v5322_v33, %v3298_v15 }
 0x39c   : > { %v2708_v53 = vpop.f32.mrf.mxu3 }
 0x39d   : > { %3382 = vxpose.xlu2.b32.cont [10/16] (narrow) %v3334_v35, 8  ;;  %v2962_v34 = vadd.f32 %v2961_v60, %v2708_v53 }
 0x39f   : > { %v2969_v26 = vpop.f32.mrf.mxu0 }
 0x3a0   : > { %v3258_v45 = vpop.f32.mrf.mxu1 }
 0x3a1   : > { %v3299_v62 = vadd.f32 %v3258_v45, %v2960_v40 }
 0x3a3   : > { %v3335_v55 = vadd.f32 %v5322_v33, %v3299_v62 }
 0x3a4   : > { %v2711_v52 = vpop.f32.mrf.mxu3 }
 0x3a5   : > { %3383 = vxpose.xlu2.b32.cont [11/16] (narrow) %v3335_v55, 8  ;;  %v2965_v39 = vadd.f32 %v2964_v49, %v2711_v52 }
 0x3a7   : > { %v2971_v56 = vpop.f32.mrf.mxu0 }
 0x3a8   : > { %v3260_v11 = vpop.f32.mrf.mxu1 }
 0x3a9   : > { %v3300_v13 = vadd.f32 %v3260_v11, %v2962_v34 }
 0x3ab   : > { %v3336_v47 = vadd.f32 %v5322_v33, %v3300_v13 }
 0x3ac   : > { %v2713_v42 = vpop.f32.mrf.mxu3 }
 0x3ad   : > { %3384 = vxpose.xlu2.b32.cont [12/16] (narrow) %v3336_v47, 8  ;;  %v2967_v14 = vadd.f32 %v2966_v0, %v2713_v42 }
 0x3b0   : > { %v3263_v5 = vpop.f32.mrf.mxu1 }
 0x3b1   : > { %v3301_v21 = vadd.f32 %v3263_v5, %v2965_v39 }
 0x3b3   : > { %v3337_v61 = vadd.f32 %v5322_v33, %v3301_v21 }
 0x3b4   : > { %v2716_v31 = vpop.f32.mrf.mxu3 }
 0x3b5   : > { %3385 = vxpose.xlu2.b32.cont [13/16] (narrow) %v3337_v61, 8  ;;  %v2970_v30 = vadd.f32 %v2969_v26, %v2716_v31 }
 0x3b8   : > { %v3265_v41 = vpop.f32.mrf.mxu1 }
 0x3b9   : > { %v3302_v1 = vadd.f32 %v3265_v41, %v2967_v14 }
 0x3bb   : > { %v3338_v59 = vadd.f32 %v5322_v33, %v3302_v1 }
 0x3bc   : > { %v2718_v19 = vpop.f32.mrf.mxu3 }
 0x3bd   : > { %3386 = vxpose.xlu2.b32.cont [14/16] (narrow) %v3338_v59, 8  ;;  %v2972_v36 = vadd.f32 %v2971_v56, %v2718_v19 }
 0x3c0   : > { %v3268_v48 = vpop.f32.mrf.mxu1 }
 0x3c1   : > { %v3303_v29 = vadd.f32 %v3268_v48, %v2970_v30 }
 0x3c3   : > { %v3339_v32 = vadd.f32 %v5322_v33, %v3303_v29 }
 0x3c5   : > { %3387 = vxpose.xlu2.b32.cont [15/16] (narrow) %v3339_v32, 8 }
 0x3c8   : > { %v3270_v24 = vpop.f32.mrf.mxu1 }
 0x3c9   : > { %v3304_v3 = vadd.f32 %v3270_v24, %v2972_v36 }
 0x3cb   : > { %v3340_v18 = vadd.f32 %v5322_v33, %v3304_v3 }
 0x3cd   : > { %3388 = vxpose.xlu2.b32.end [16/16] (narrow) %v3340_v18, 8 }
 0x3ee   : > { %v3389_v17 = vpop.trf.xlu2 }
 0x3ef   : > { %3406 = vst [vmem:[%s217_s8 + $0x8] sm:$0xff] %v3389_v17 }
 0x3f0   : > { %4362 = shalt.err (!%p4359_p3)
}
 0x3f1   : > { %4288 = dma.vmem_to_hbm [thread:$0]  (%p4472_p5), %s3422_s13, 256, %s3424_s14, %s3408_s15  }
 0x3f2 PF: > { %p4294_p4 = scmp.ge.s32.totalorder %s4397_s21, 2  ;;  %s3435_s6 = sand.u32 1, %s4385_s18  }
 0x3f3   : > { %s3436_s7 = scalar_lea.sflag [#allocation5], %s3435_s6 }
 0x3f4   : > { %p4291_p7 = pnand %p4294_p4, %p4476_p6 }
 0x3f6   : > { %p4292_p8 = pneg %p4291_p7 }
 0x3f8   : > { %4380 = dma.done.wait (%p4292_p8), %s3436_s7, 256  }
 0x3f9   : > { %4382 = vsyncadd (%p4292_p8), %s3436_s7, 4294967040  ;;  %p15_p9 = scmp.ge.s32.totalorder %s4459_s24, 4   ;;  %s5464_s18 = smov %s4389_s19 }
 0x3fa   : > { %s5465_s19 = smov %s4393_s20  ;;  %s5466_s20 = smov %s4470_s27 }
 0x3fb   : > { %s5467_s21 = smov %s4459_s24  ;;  %17 = sbr.rel (!%p15_p9) target bundleno = 3 (0x3), region = 85 }
 0x400   :  { %3442 = vsyncpa [#allocation5], 1 }
 0x401   :  { %3444 = vsyncpa [#allocation5 + $0x1], 1 }

</bundles_post_ra>
